<compile_context>
chip_gen: v5e
topology: v5e:2x2
jax: 0.10.0
libtpu: 0.0.40
codegen_flags: <defaults>
</compile_context>

<pallas_src>
import functools

import jax
import jax.numpy as jnp
import numpy as np
from jax.experimental import pallas as pl
from jax.experimental.pallas import tpu as pltpu

LN_EPS = 1e-5                 # PyTorch nn.LayerNorm default
LANE = 128                    # TPU lane width
ROW_ALIGN = 16                # row-tile granularity (bf16 packs 16 rows / tile)
MXU_DTYPE = jnp.bfloat16      # matmul operand dtype (f32 accumulation)
FFN_HIDDEN_CHUNK = 512        # hidden-dim tile streamed per FFN grid step
LINEAR_K_CHUNK = 1024         # contraction tile for the generic linear kernel


# ----------------------------------------------------------------------------
# small host-side helpers
# ----------------------------------------------------------------------------
def _cdiv(a, b):
    return -(-a // b)


def _round_up(n, m):
    return _cdiv(n, m) * m


def _pad_axis(a, axis, target):
    if a.shape[axis] == target:
        return a
    cfg = [(0, 0)] * a.ndim
    cfg[axis] = (0, target - a.shape[axis])
    return jnp.pad(a, cfg)


def _pad2(w, rows, cols):
    return _pad_axis(_pad_axis(w, 0, rows), 1, cols)


# ----------------------------------------------------------------------------
# generation-aware sizing (v5e/v6e: 128 MiB VMEM; v7x: 64 MiB per TensorCore)
# ----------------------------------------------------------------------------
def _detect_phys_vmem_bytes():
    try:
        info = pltpu.get_tpu_info()
        for attr in ("vmem_capacity_bytes", "vmem_size_bytes", "vmem_bytes"):
            v = getattr(info, attr, None)
            if v:
                return int(v)
    except Exception:
        pass
    try:
        kind = jax.devices()[0].device_kind.lower()
        if any(g in kind for g in ("v4", "v5", "v6")):
            return 128 << 20
    except Exception:
        pass
    return 64 << 20           # conservative default (v7x per-TC VMEM)


_PHYS_VMEM = _detect_phys_vmem_bytes()
_VMEM_CAP = int(min(_PHYS_VMEM * 3 // 4, 100 << 20))   # keep >=25% headroom
DEFAULT_ROW_TILE = 512 if _PHYS_VMEM >= (96 << 20) else 256


def _clamp_vmem(est):
    return int(min(max(int(est), 4 << 20), _VMEM_CAP))


def _pick_row_tile(n_rows, row_tile):
    tm = min(int(row_tile), _round_up(n_rows, ROW_ALIGN))
    if n_rows >= 2 * ROW_ALIGN:
        # Guarantee >= 2 grid steps: the pipeline has something to overlap and
        # the "parallel" axis can shard across v7x's two TensorCores.
        tm = min(tm, _round_up(_cdiv(n_rows, 2), ROW_ALIGN))
    return max(ROW_ALIGN, _round_up(tm, ROW_ALIGN))


def _pick_chunk(total, target):
    """Largest multiple of LANE <= target dividing `total` (total % LANE == 0)."""
    c = max(LANE, (min(total, target) // LANE) * LANE)
    while total % c:
        c -= LANE
    return c


# ----------------------------------------------------------------------------
# probe whether pipeline_mode=pl.Buffered(1) is supported on this jax/libtpu;
# fall back to default (double-buffered) constant specs if not.
# ----------------------------------------------------------------------------
def _probe_single_buffer_consts():
    try:
        def _k(x_ref, w_ref, b_ref, o_ref, acc_ref):
            @pl.when(pl.program_id(1) == 0)
            def _():
                acc_ref[...] = jnp.zeros_like(acc_ref)

            acc_ref[...] += jnp.dot(x_ref[...], w_ref[...],
                                    preferred_element_type=jnp.float32)

            @pl.when(pl.program_id(1) == pl.num_programs(1) - 1)
            def _():
                o_ref[...] = acc_ref[...] + b_ref[...]

        x = jnp.ones((16, 256), jnp.float32)
        w = jnp.ones((256, 128), jnp.float32)
        bias = jnp.ones((1, 128), jnp.float32)
        out = pl.pallas_call(
            _k,
            out_shape=jax.ShapeDtypeStruct((16, 128), jnp.float32),
            grid=(1, 2),
            in_specs=[pl.BlockSpec((16, 128), lambda i, k: (i, k)),
                      pl.BlockSpec((128, 128), lambda i, k: (k, 0)),
                      pl.BlockSpec((1, 128), lambda i, k: (0, 0),
                                   pipeline_mode=pl.Buffered(1))],
            out_specs=pl.BlockSpec((16, 128), lambda i, k: (i, 0)),
            scratch_shapes=[pltpu.VMEM((16, 128), jnp.float32)],
            compiler_params=pltpu.CompilerParams(
                dimension_semantics=("parallel", "arbitrary")),
        )(x, w, bias)
        jax.block_until_ready(out)
        return bool(jnp.allclose(out, 257.0))
    except Exception:
        return False


_SINGLE_BUF_CONSTS = _probe_single_buffer_consts()


def _const_spec(shape):
    """Spec for an operand whose block index never changes (single-buffered
    when supported, so it is not pointlessly double-buffered in VMEM)."""
    idx = lambda *_: (0,) * len(shape)
    if _SINGLE_BUF_CONSTS:
        return pl.BlockSpec(shape, idx, pipeline_mode=pl.Buffered(1))
    return pl.BlockSpec(shape, idx)


# ----------------------------------------------------------------------------
# in-kernel helpers
# ----------------------------------------------------------------------------
def _masked_layer_norm(out, gamma, beta, d_real):
    """LayerNorm over the first `d_real` lanes of a (rows, d_pad) f32 tile.

    gamma/beta are zero-padded past d_real, so padded output lanes stay 0.
    """
    d_pad = out.shape[-1]
    if d_real == d_pad:
        mean = jnp.mean(out, axis=-1, keepdims=True)
        cent = out - mean
        var = jnp.mean(cent * cent, axis=-1, keepdims=True)
    else:
        lane = jax.lax.broadcasted_iota(jnp.int32, out.shape, out.ndim - 1)
        mask = lane < d_real
        inv_d = 1.0 / float(d_real)
        mean = jnp.sum(jnp.where(mask, out, 0.0), axis=-1, keepdims=True) * inv_d
        cent = jnp.where(mask, out - mean, 0.0)
        var = jnp.sum(cent * cent, axis=-1, keepdims=True) * inv_d
    y = cent * jax.lax.rsqrt(var + LN_EPS)
    return y * gamma + beta


# ----------------------------------------------------------------------------
# kernels
# ----------------------------------------------------------------------------
def _linear_kernel(x_ref, w_ref, b_ref, o_ref, acc_ref):
    """o = x @ w + b, contraction (K) tiled as the innermost grid axis."""
    k = pl.program_id(1)

    @pl.when(k == 0)
    def _():
        acc_ref[...] = jnp.zeros_like(acc_ref)

    acc_ref[...] += jnp.dot(x_ref[...].astype(MXU_DTYPE), w_ref[...],
                            preferred_element_type=jnp.float32)

    @pl.when(k == pl.num_programs(1) - 1)
    def _():
        o_ref[...] = (acc_ref[...] + b_ref[...]).astype(o_ref.dtype)


def _attention_kernel(q_ref, k_ref, v_ref, o_ref):
    """context = softmax(Q K^T) V for a tile of batch*head groups.

    The 1/sqrt(dim_head) scale is pre-folded into the Q projection weights, so
    no per-score multiply is needed here; the softmax divide uses the EUP
    approximate reciprocal.
    """
    q = q_ref[...]          # bf16, already scaled
    k = k_ref[...]
    v = v_ref[...]
    s = jnp.einsum("bqd,bkd->bqk", q, k, preferred_element_type=jnp.float32)
    m = jnp.max(s, axis=-1, keepdims=True)
    p = jnp.exp(s - m)
    denom = jnp.sum(p, axis=-1, keepdims=True)
    p = p * pl.reciprocal(denom, approx=True)
    ctx = jnp.einsum("bqk,bkd->bqd", p.astype(MXU_DTYPE), v,
                     preferred_element_type=jnp.float32)
    o_ref[...] = ctx.astype(o_ref.dtype)


def _encoder_tail_kernel(ctx_ref, x_ref, wo_ref, bo_ref, g1_ref, be1_ref,
                         w1_ref, b1_ref, w2_ref, b2_ref, g2_ref, be2_ref,
                         o_ref, attn_sc, acc_sc, *, d_real):
    """Fused encoder tail for one row tile:
         attn_out = LayerNorm(ctx @ Wo + bo + x)
         ffn      = relu(attn_out @ W1 + b1) @ W2          (hidden chunked over
                                                             grid axis 1)
         o        = LayerNorm(ffn + b2 + attn_out)
       Dropout p = 0 -> identity.  attn_out / ffn never leave VMEM.
    """
    hi = pl.program_id(1)
    nh = pl.num_programs(1)

    @pl.when(hi == 0)
    def _():
        out = jnp.dot(ctx_ref[...], wo_ref[...],
                      preferred_element_type=jnp.float32)
        out = out + bo_ref[...] + x_ref[...].astype(jnp.float32)
        attn_sc[...] = _masked_layer_norm(out, g1_ref[...], be1_ref[...], d_real)
        acc_sc[...] = jnp.zeros_like(acc_sc)

    a = attn_sc[...].astype(MXU_DTYPE)
    hid = jnp.dot(a, w1_ref[...], preferred_element_type=jnp.float32)
    hid = jnp.maximum(hid + b1_ref[...], 0.0)
    acc_sc[...] += jnp.dot(hid.astype(MXU_DTYPE), w2_ref[...],
                           preferred_element_type=jnp.float32)

    @pl.when(hi == nh - 1)
    def _():
        out = acc_sc[...] + b2_ref[...] + attn_sc[...]
        o_ref[...] = _masked_layer_norm(
            out, g2_ref[...], be2_ref[...], d_real).astype(o_ref.dtype)


# ----------------------------------------------------------------------------
# pallas_call wrappers
# ----------------------------------------------------------------------------
def _linear(x2d, w_bf16, b_row, out_dtype, *, row_tile):
    """out = x2d @ w + b.  Row-tiled ("parallel") and K-tiled ("arbitrary")."""
    n_rows, in_p = x2d.shape
    out_p = w_bf16.shape[1]
    tm = _pick_row_tile(n_rows, row_tile)
    n_pad = _round_up(n_rows, tm)
    x2d = _pad_axis(x2d, 0, n_pad)
    tk = _pick_chunk(in_p, LINEAR_K_CHUNK)
    grid = (n_pad // tm, in_p // tk)

    xb = x2d.dtype.itemsize
    ob = jnp.dtype(out_dtype).itemsize
    est = (2 * tm * tk * xb + tm * tk * 2            # x tile (x2 buffers) + bf16 cast
           + 2 * tk * out_p * 2                      # weight chunk (x2 buffers)
           + (1 if _SINGLE_BUF_CONSTS else 2) * out_p * 4
           + 2 * tm * out_p * ob                     # output tile (x2 buffers)
           + 2 * tm * out_p * 4                      # acc scratch + dot temporary
           + (2 << 20))

    out = pl.pallas_call(
        _linear_kernel,
        out_shape=jax.ShapeDtypeStruct((n_pad, out_p), out_dtype),
        grid=grid,
        in_specs=[pl.BlockSpec((tm, tk), lambda i, k: (i, k)),
                  pl.BlockSpec((tk, out_p), lambda i, k: (k, 0)),
                  _const_spec((1, out_p))],
        out_specs=pl.BlockSpec((tm, out_p), lambda i, k: (i, 0)),
        scratch_shapes=[pltpu.VMEM((tm, out_p), jnp.float32)],
        compiler_params=pltpu.CompilerParams(
            dimension_semantics=("parallel", "arbitrary"),
            vmem_limit_bytes=_clamp_vmem(est)),
    )(x2d, w_bf16, b_row)
    return out[:n_rows]


def _attention(q3, k3, v3):
    """q3/k3/v3: (bh, s, dhp) bf16 (scale folded into Q).  Returns bf16 ctx."""
    bh, s, dhp = q3.shape
    # VMEM-budget-driven batch*head tile (no divisor-search cliff: pad bh).
    per_group = (6 * s * dhp * 2        # q/k/v blocks, double-buffered, bf16
                 + 2 * s * dhp * 2      # output block, double-buffered, bf16
                 + 2 * s * s * 4 + s * s * 2   # scores f32, exp f32, p bf16
                 + s * dhp * 4)         # ctx f32 intermediate
    budget = max(_VMEM_CAP - (4 << 20), 4 << 20)
    bt = int(max(1, min(bh, budget // per_group, 64)))
    if bh >= 2:
        bt = min(bt, _cdiv(bh, 2))      # >= 2 grid steps for megacore/pipeline
    bh_pad = _round_up(bh, bt)
    if bh_pad != bh:
        pad = [(0, bh_pad - bh), (0, 0), (0, 0)]
        q3, k3, v3 = (jnp.pad(a, pad) for a in (q3, k3, v3))

    # TODO(synk): very long sequences would need flash-style K/V tiling; the
    # whole (s, s) score tile is materialized per batch*head group here.
    spec = pl.BlockSpec((bt, s, dhp), lambda i: (i, 0, 0))
    est = bt * per_group + (2 << 20)
    out = pl.pallas_call(
        _attention_kernel,
        out_shape=jax.ShapeDtypeStruct((bh_pad, s, dhp), MXU_DTYPE),
        grid=(bh_pad // bt,),
        in_specs=[spec, spec, spec],
        out_specs=spec,
        compiler_params=pltpu.CompilerParams(
            dimension_semantics=("parallel",),
            vmem_limit_bytes=_clamp_vmem(est)),
    )(q3, k3, v3)
    return out[:bh]


def _encoder_tail(ctx2d, x2d, wo, bo, g1, be1, w1, b1, w2, b2, g2, be2,
                  *, d_real, row_tile):
    """Fused Wo-projection + residual + LN1 + FFN + residual + LN2."""
    n_rows, dp = x2d.shape
    hp = w1.shape[1]
    tm = _pick_row_tile(n_rows, row_tile)
    n_pad = _round_up(n_rows, tm)
    ctx2d = _pad_axis(ctx2d, 0, n_pad)
    x2d = _pad_axis(x2d, 0, n_pad)
    hc = _pick_chunk(hp, FFN_HIDDEN_CHUNK)
    grid = (n_pad // tm, hp // hc)

    est = (2 * tm * dp * (2 + 4)                           # ctx bf16 + x f32 tiles (x2)
           + (1 if _SINGLE_BUF_CONSTS else 2) * dp * dp * 2  # Wo bf16
           + 2 * (dp * hc * 2 + hc * dp * 2 + hc * 4)      # W1/W2/b1 chunks (x2)
           + 2 * tm * dp * 4                               # output tile (x2)
           + 2 * tm * dp * 4                               # attn/acc scratch
           + tm * hc * 4 + tm * hc * 2                     # hid f32 + bf16 cast
           + 4 * tm * dp * 4                               # LN / residual temporaries
           + 16 * dp * 4                                   # small const rows
           + (2 << 20))

    out = pl.pallas_call(
        functools.partial(_encoder_tail_kernel, d_real=d_real),
        out_shape=jax.ShapeDtypeStruct((n_pad, dp), jnp.float32),
        grid=grid,
        in_specs=[
            pl.BlockSpec((tm, dp), lambda i, h: (i, 0)),       # ctx (bf16)
            pl.BlockSpec((tm, dp), lambda i, h: (i, 0)),       # x residual (f32)
            _const_spec((dp, dp)),                             # Wo
            _const_spec((1, dp)),                              # bo
            _const_spec((1, dp)),                              # ln1 gamma
            _const_spec((1, dp)),                              # ln1 beta
            pl.BlockSpec((dp, hc), lambda i, h: (0, h)),       # W1 chunk
            pl.BlockSpec((1, hc), lambda i, h: (0, h)),        # b1 chunk
            pl.BlockSpec((hc, dp), lambda i, h: (h, 0)),       # W2 chunk
            _const_spec((1, dp)),                              # b2
            _const_spec((1, dp)),                              # ln2 gamma
            _const_spec((1, dp)),                              # ln2 beta
        ],
        out_specs=pl.BlockSpec((tm, dp), lambda i, h: (i, 0)),
        scratch_shapes=[pltpu.VMEM((tm, dp), jnp.float32),     # attn_out
                        pltpu.VMEM((tm, dp), jnp.float32)],    # ffn accumulator
        compiler_params=pltpu.CompilerParams(
            dimension_semantics=("parallel", "arbitrary"),
            vmem_limit_bytes=_clamp_vmem(est)),
    )(ctx2d, x2d, wo, bo, g1, be1, w1, b1, w2, b2, g2, be2)
    return out[:n_rows]


# ----------------------------------------------------------------------------
# model
# ----------------------------------------------------------------------------
def _encoder_layer(x, p, *, num_head, row_tile):
    b, s, d = x.shape
    dh = d // num_head
    dp = _round_up(d, LANE)
    dhp = _round_up(dh, LANE)          # lane-dense head dim for the MXU
    hp = _round_up(p["w1"].shape[1], LANE)
    n = b * s
    scale = float(dh) ** -0.5

    x2d = _pad_axis(x.reshape(n, d), 1, dp)                 # f32 (residual path)

    # ---- fused Q/K/V projection; 1/sqrt(dh) folded into the Q weights -------
    w_qkv = jnp.concatenate(
        [_pad2(p["wq"] * scale, dp, dp), _pad2(p["wk"], dp, dp),
         _pad2(p["wv"], dp, dp)], axis=1).astype(MXU_DTYPE)
    b_qkv = jnp.concatenate(
        [_pad_axis(p["bq"] * scale, 0, dp), _pad_axis(p["bk"], 0, dp),
         _pad_axis(p["bv"], 0, dp)]).reshape(1, 3 * dp)
    qkv = _linear(x2d, w_qkv, b_qkv, MXU_DTYPE, row_tile=row_tile)   # bf16

    q = qkv[:, 0 * dp:0 * dp + d]
    k = qkv[:, 1 * dp:1 * dp + d]
    v = qkv[:, 2 * dp:2 * dp + d]

    # Replicate PyTorch's literal `.view(batch*num_head, -1, dim_head)` (a
    # row-major regrouping, NOT a conventional head split) -- keep it faithful.
    q3 = _pad_axis(q.reshape(b * num_head, s, dh), 2, dhp)
    k3 = _pad_axis(k.reshape(b * num_head, s, dh), 2, dhp)
    v3 = _pad_axis(v.reshape(b * num_head, s, dh), 2, dhp)
    ctx = _attention(q3, k3, v3)                                     # bf16
    ctx2d = _pad_axis(ctx[:, :, :dh].reshape(n, d), 1, dp)           # bf16

    # ---- fused encoder tail (proj + LN1 + FFN + LN2), attn_out stays in VMEM
    return _encoder_tail(
        ctx2d, x2d,
        _pad2(p["wo"], dp, dp).astype(MXU_DTYPE),
        _pad_axis(p["bo"], 0, dp).reshape(1, dp),
        _pad_axis(p["ln1_g"], 0, dp).reshape(1, dp),
        _pad_axis(p["ln1_b"], 0, dp).reshape(1, dp),
        _pad2(p["w1"], dp, hp).astype(MXU_DTYPE),
        _pad_axis(p["b1"], 0, hp).reshape(1, hp),
        _pad2(p["w2"], hp, dp).astype(MXU_DTYPE),
        _pad_axis(p["b2"], 0, dp).reshape(1, dp),
        _pad_axis(p["ln2_g"], 0, dp).reshape(1, dp),
        _pad_axis(p["ln2_b"], 0, dp).reshape(1, dp),
        d_real=d, row_tile=row_tile)[:, :d].reshape(b, s, d)


@functools.partial(jax.jit, static_argnames=("num_head", "row_tile"))
def attention_model_forward(tokens, params, *, num_head,
                            row_tile=DEFAULT_ROW_TILE):
    # TODO(synk): embedding gather + positional-encoding add kept in plain JAX
    # (tiny data-dependent gather); dropout p=0.0 is the identity.
    x = params["embedding"][tokens] + params["pos_encoding"][None, :, :]
    b, s, d = x.shape

    for layer in params["encoders"]:
        x = _encoder_layer(x, layer, num_head=num_head, row_tile=row_tile)

    # Final classifier: flatten to (B, S*D), K-tiled lane-padded linear kernel.
    flat = x.reshape(b, s * d)
    in_p = _round_up(s * d, LANE)
    num_labels = params["fc_w"].shape[1]
    out_p = _round_up(num_labels, LANE)
    logits = _linear(
        _pad_axis(flat, 1, in_p),
        _pad2(params["fc_w"], in_p, out_p).astype(MXU_DTYPE),
        _pad_axis(params["fc_b"], 0, out_p).reshape(1, out_p),
        jnp.float32, row_tile=row_tile)
    return logits[:, :num_labels]


# ----------------------------------------------------------------------------
# parameter init (mimics nn.Linear / nn.Embedding / nn.LayerNorm defaults)
# ----------------------------------------------------------------------------
def init_params(key, *, vocab_size, dim_model, hidden, num_encoder, seq_len,
                num_labels):
    keys = jax.random.split(key, 2 + num_encoder)
    emb = jax.random.normal(keys[0], (vocab_size, dim_model), jnp.float32)
    emb = emb.at[vocab_size - 1].set(0.0)      # padding_idx row -> zeros

    # sinusoidal positional encoding (matches Positional_Encoding)
    pos = np.arange(seq_len)[:, None].astype(np.float64)
    i = np.arange(dim_model)[None, :]
    angle = pos / np.power(10000.0, (i // 2 * 2.0) / dim_model)
    pe = np.where(i % 2 == 0, np.sin(angle), np.cos(angle)).astype(np.float32)

    def linear(k, fan_in, fan_out):
        k1, k2 = jax.random.split(k)
        lim = 1.0 / float(fan_in) ** 0.5
        w = jax.random.uniform(k1, (fan_in, fan_out), jnp.float32, -lim, lim)
        bias = jax.random.uniform(k2, (fan_out,), jnp.float32, -lim, lim)
        return w, bias

    encoders = []
    for l in range(num_encoder):
        ks = jax.random.split(keys[2 + l], 6)
        wq, bq = linear(ks[0], dim_model, dim_model)
        wk, bk = linear(ks[1], dim_model, dim_model)
        wv, bv = linear(ks[2], dim_model, dim_model)
        wo, bo = linear(ks[3], dim_model, dim_model)
        w1, b1 = linear(ks[4], dim_model, hidden)
        w2, b2 = linear(ks[5], hidden, dim_model)
        encoders.append(dict(
            wq=wq, bq=bq, wk=wk, bk=bk, wv=wv, bv=bv, wo=wo, bo=bo,
            w1=w1, b1=b1, w2=w2, b2=b2,
            ln1_g=jnp.ones((dim_model,), jnp.float32),
            ln1_b=jnp.zeros((dim_model,), jnp.float32),
            ln2_g=jnp.ones((dim_model,), jnp.float32),
            ln2_b=jnp.zeros((dim_model,), jnp.float32)))

    fc_w, fc_b = linear(keys[1], seq_len * dim_model, num_labels)
    return dict(embedding=emb, pos_encoding=jnp.asarray(pe),
                encoders=encoders, fc_w=fc_w, fc_b=fc_b)


# ----------------------------------------------------------------------------
# pure-JAX f32 reference (mirrors the PyTorch forward exactly)
# ----------------------------------------------------------------------------
def _layer_norm_ref(x, g, b):
    mean = jnp.mean(x, axis=-1, keepdims=True)
    var = jnp.mean((x - mean) ** 2, axis=-1, keepdims=True)
    return (x - mean) * jax.lax.rsqrt(var + LN_EPS) * g + b


def reference_forward(tokens, params, num_head):
    x = params["embedding"][tokens] + params["pos_encoding"][None, :, :]
    b, s, d = x.shape
    dh = d // num_head
    for p in params["encoders"]:
        x2d = x.reshape(b * s, d)
        q = (x2d @ p["wq"] + p["bq"]).reshape(b * num_head, s, dh)
        k = (x2d @ p["wk"] + p["bk"]).reshape(b * num_head, s, dh)
        v = (x2d @ p["wv"] + p["bv"]).reshape(b * num_head, s, dh)
        att = jnp.einsum("bqd,bkd->bqk", q, k) * (dh ** -0.5)
        att = jax.nn.softmax(att, axis=-1)
        ctx = jnp.einsum("bqk,bkd->bqd", att, v).reshape(b * s, d)
        o = _layer_norm_ref(ctx @ p["wo"] + p["bo"] + x2d, p["ln1_g"], p["ln1_b"])
        h = jnp.maximum(o @ p["w1"] + p["b1"], 0.0)
        f = _layer_norm_ref(h @ p["w2"] + p["b2"] + o, p["ln2_g"], p["ln2_b"])
        x = f.reshape(b, s, d)
    flat = x.reshape(b, s * d)
    return flat @ params["fc_w"] + params["fc_b"]


if __name__ == "__main__":
    batch, seq_len = 2, 8
    vocab_size, dim_model, hidden = 32, 32, 64
    num_head, num_encoder, num_labels = 4, 2, 4

    key = jax.random.PRNGKey(0)
    k_tok, k_par = jax.random.split(key)
    tokens = jax.random.randint(k_tok, (batch, seq_len), 0, vocab_size,
                                dtype=jnp.int32)
    params = init_params(k_par, vocab_size=vocab_size, dim_model=dim_model,
                         hidden=hidden, num_encoder=num_encoder,
                         seq_len=seq_len, num_labels=num_labels)

    logits = attention_model_forward(tokens, params, num_head=num_head)
    logits = jax.block_until_ready(logits)

    ref = reference_forward(tokens, params, num_head)
    assert logits.shape == (batch, num_labels), logits.shape
    assert logits.dtype == jnp.float32
    max_err = float(jnp.max(jnp.abs(logits - ref)))
    # bf16 MXU operands / activations (f32 accumulation) + approx softmax
    # reciprocal -> small numeric drift vs the f32 reference.
    assert jnp.allclose(logits, ref, atol=5e-2, rtol=5e-2), f"max_err={max_err}"

    print("KERNEL_OK")
</pallas_src>

<mosaic_0001>
module attributes {stable_mosaic.version = 11 : i64} {
  func.func @_k(%arg0: i32, %arg1: i32, %arg2: memref<16x128xf32, #tpu.memory_space<vmem>>, %arg3: memref<128x128xf32, #tpu.memory_space<vmem>>, %arg4: memref<1x128xf32, #tpu.memory_space<vmem>>, %arg5: memref<16x128xf32, #tpu.memory_space<vmem>>, %arg6: memref<16x128xf32, #tpu.memory_space<vmem>>) attributes {dimension_semantics = [#tpu.dimension_semantics<parallel>, #tpu.dimension_semantics<arbitrary>], iteration_bounds = array<i64: 1, 2>, scalar_prefetch = 0 : i64, scratch_operands = 1 : i64, tpu.core_type = #tpu.core_type<tc>, window_params = [{transform_indices = @transform_0, window_bounds = array<i64: 16, 128>}, {transform_indices = @transform_1, window_bounds = array<i64: 128, 128>}, {pipeline_mode = #tpu.pipeline_mode<synchronous>, transform_indices = @transform_2, window_bounds = array<i64: 1, 128>}, {transform_indices = @transform_3, window_bounds = array<i64: 16, 128>}]} {
    %c0_i32 = arith.constant 0 : i32
    %0 = arith.cmpi eq, %arg1, %c0_i32 : i32
    %1 = arith.extui %0 : i1 to i32
    %c0_i32_0 = arith.constant 0 : i32
    %2 = arith.cmpi ne, %1, %c0_i32_0 : i32
    scf.if %2 {
      %cst_9 = arith.constant 0.000000e+00 : f32
      %12 = vector.broadcast %cst_9 : f32 to vector<16x128xf32>
      %c0_10 = arith.constant 0 : index
      %c0_11 = arith.constant 0 : index
      %13 = vector.load %arg6[%c0_10, %c0_11] : memref<16x128xf32, #tpu.memory_space<vmem>>, vector<16x128xf32>
      tpu.vector_store %arg6[%c0_10, %c0_11], %12 {strides = array<i32>} : memref<16x128xf32, #tpu.memory_space<vmem>>, vector<16x128xf32>,
    } else {
    }
    %c0 = arith.constant 0 : index
    %c0_1 = arith.constant 0 : index
    %3 = vector.load %arg6[%c0, %c0_1] : memref<16x128xf32, #tpu.memory_space<vmem>>, vector<16x128xf32>
    %c0_2 = arith.constant 0 : index
    %c0_3 = arith.constant 0 : index
    %4 = vector.load %arg2[%c0_2, %c0_3] : memref<16x128xf32, #tpu.memory_space<vmem>>, vector<16x128xf32>
    %c0_4 = arith.constant 0 : index
    %c0_5 = arith.constant 0 : index
    %5 = vector.load %arg3[%c0_4, %c0_5] : memref<128x128xf32, #tpu.memory_space<vmem>>, vector<128x128xf32>
    %cst = arith.constant dense<0.000000e+00> : vector<16x128xf32>
    %6 = tpu.matmul %4, %5, %cst {dimension_numbers = #tpu.dot_dimension_numbers<[1], [0], [0], [1], [0, 0, 1, 1], [], []>} : vector<16x128xf32>, vector<128x128xf32>, vector<16x128xf32> -> vector<16x128xf32>
    %7 = arith.addf %3, %6 : vector<16x128xf32>
    %c0_6 = arith.constant 0 : index
    %c0_7 = arith.constant 0 : index
    %8 = vector.load %arg6[%c0_6, %c0_7] : memref<16x128xf32, #tpu.memory_space<vmem>>, vector<16x128xf32>
    tpu.vector_store %arg6[%c0_6, %c0_7], %7 {strides = array<i32>} : memref<16x128xf32, #tpu.memory_space<vmem>>, vector<16x128xf32>,
    %c1_i32 = arith.constant 1 : i32
    %9 = arith.cmpi eq, %arg1, %c1_i32 : i32
    %10 = arith.extui %9 : i1 to i32
    %c0_i32_8 = arith.constant 0 : i32
    %11 = arith.cmpi ne, %10, %c0_i32_8 : i32
    scf.if %11 {
      %c0_9 = arith.constant 0 : index
      %c0_10 = arith.constant 0 : index
      %12 = vector.load %arg6[%c0_9, %c0_10] : memref<16x128xf32, #tpu.memory_space<vmem>>, vector<16x128xf32>
      %c0_11 = arith.constant 0 : index
      %c0_12 = arith.constant 0 : index
      %13 = vector.load %arg4[%c0_11, %c0_12] : memref<1x128xf32, #tpu.memory_space<vmem>>, vector<1x128xf32>
      %14 = vector.broadcast %13 : vector<1x128xf32> to vector<16x128xf32>
      %15 = arith.addf %12, %14 : vector<16x128xf32>
      %c0_13 = arith.constant 0 : index
      %c0_14 = arith.constant 0 : index
      %16 = vector.load %arg5[%c0_13, %c0_14] : memref<16x128xf32, #tpu.memory_space<vmem>>, vector<16x128xf32>
      tpu.vector_store %arg5[%c0_13, %c0_14], %15 {strides = array<i32>} : memref<16x128xf32, #tpu.memory_space<vmem>>, vector<16x128xf32>,
    } else {
    }
    return
  }
  func.func @transform_0(%arg0: i32, %arg1: i32) -> (i32, i32) {
    %c0_i32 = arith.constant 0 : i32
    return %arg0, %arg1 : i32, i32
  }
  func.func @transform_1(%arg0: i32, %arg1: i32) -> (i32, i32) {
    %c0_i32 = arith.constant 0 : i32
    %c0_i32_0 = arith.constant 0 : i32
    return %arg1, %c0_i32 : i32, i32
  }
  func.func @transform_2(%arg0: i32, %arg1: i32) -> (i32, i32) {
    %c0_i32 = arith.constant 0 : i32
    %c0_i32_0 = arith.constant 0 : i32
    %c0_i32_1 = arith.constant 0 : i32
    return %c0_i32, %c0_i32_0 : i32, i32
  }
  func.func @transform_3(%arg0: i32, %arg1: i32) -> (i32, i32) {
    %c0_i32 = arith.constant 0 : i32
    %c0_i32_0 = arith.constant 0 : i32
    return %arg0, %c0_i32 : i32, i32
  }
}

module attributes {stable_mosaic.version = 11 : i64} {
  func.func @_attention_kernel(%arg0: i32, %arg1: memref<4x8x128xbf16, #tpu.memory_space<vmem>>, %arg2: memref<4x8x128xbf16, #tpu.memory_space<vmem>>, %arg3: memref<4x8x128xbf16, #tpu.memory_space<vmem>>, %arg4: memref<4x8x128xbf16, #tpu.memory_space<vmem>>) attributes {dimension_semantics = [#tpu.dimension_semantics<parallel>], iteration_bounds = array<i64: 2>, scalar_prefetch = 0 : i64, scratch_operands = 0 : i64, tpu.core_type = #tpu.core_type<tc>, window_params = [{transform_indices = @transform_0, window_bounds = array<i64: 4, 8, 128>}, {transform_indices = @transform_1, window_bounds = array<i64: 4, 8, 128>}, {transform_indices = @transform_2, window_bounds = array<i64: 4, 8, 128>}, {transform_indices = @transform_3, window_bounds = array<i64: 4, 8, 128>}]} {
    %c0 = arith.constant 0 : index
    %c0_0 = arith.constant 0 : index
    %c0_1 = arith.constant 0 : index
    %0 = vector.load %arg1[%c0, %c0_0, %c0_1] : memref<4x8x128xbf16, #tpu.memory_space<vmem>>, vector<4x8x128xbf16>
    %c0_2 = arith.constant 0 : index
    %c0_3 = arith.constant 0 : index
    %c0_4 = arith.constant 0 : index
    %1 = vector.load %arg2[%c0_2, %c0_3, %c0_4] : memref<4x8x128xbf16, #tpu.memory_space<vmem>>, vector<4x8x128xbf16>
    %c0_5 = arith.constant 0 : index
    %c0_6 = arith.constant 0 : index
    %c0_7 = arith.constant 0 : index
    %2 = vector.load %arg3[%c0_5, %c0_6, %c0_7] : memref<4x8x128xbf16, #tpu.memory_space<vmem>>, vector<4x8x128xbf16>
    "tpu.trace_start"() <{level = 10 : i32, message = "bqd,bkd->bqk"}> : () -> ()
    %cst = arith.constant dense<0.000000e+00> : vector<4x8x8xf32>
    %3 = tpu.matmul %0, %1, %cst {dimension_numbers = #tpu.dot_dimension_numbers<[2], [2], [1], [1], [0, 0, 0, 1, 1, 1], [0], [0]>} : vector<4x8x128xbf16>, vector<4x8x128xbf16>, vector<4x8x8xf32> -> vector<4x8x8xf32>
    "tpu.trace_stop"() : () -> ()
    %cst_8 = arith.constant dense<0xFF800000> : vector<4x8xf32>
    %4 = vector.multi_reduction <maximumf>, %3, %cst_8 [2] : vector<4x8x8xf32> to vector<4x8xf32>
    %5 = vector.shape_cast %4 : vector<4x8xf32> to vector<4x8x1xf32>
    %6 = vector.broadcast %5 : vector<4x8x1xf32> to vector<4x8x8xf32>
    %7 = arith.subf %3, %6 : vector<4x8x8xf32>
    %8 = math.exp %7 : vector<4x8x8xf32>
    %cst_9 = arith.constant dense<0.000000e+00> : vector<4x8xf32>
    %9 = vector.multi_reduction <add>, %8, %cst_9 [2] : vector<4x8x8xf32> to vector<4x8xf32>
    %10 = vector.shape_cast %9 : vector<4x8xf32> to vector<4x8x1xf32>
    %11 = tpu.reciprocal %10 {approx = true} : vector<4x8x1xf32> -> vector<4x8x1xf32>
    %12 = vector.broadcast %11 : vector<4x8x1xf32> to vector<4x8x8xf32>
    %13 = arith.mulf %8, %12 : vector<4x8x8xf32>
    %14 = arith.truncf %13 : vector<4x8x8xf32> to vector<4x8x8xbf16>
    "tpu.trace_start"() <{level = 10 : i32, message = "bqk,bkd->bqd"}> : () -> ()
    %cst_10 = arith.constant dense<0.000000e+00> : vector<4x8x128xf32>
    %15 = tpu.matmul %14, %2, %cst_10 {dimension_numbers = #tpu.dot_dimension_numbers<[2], [1], [1], [2], [0, 0, 0, 1, 1, 2], [0], [0]>} : vector<4x8x8xbf16>, vector<4x8x128xbf16>, vector<4x8x128xf32> -> vector<4x8x128xf32>
    "tpu.trace_stop"() : () -> ()
    %16 = arith.truncf %15 : vector<4x8x128xf32> to vector<4x8x128xbf16>
    %c0_11 = arith.constant 0 : index
    %c0_12 = arith.constant 0 : index
    %c0_13 = arith.constant 0 : index
    %17 = vector.load %arg4[%c0_11, %c0_12, %c0_13] : memref<4x8x128xbf16, #tpu.memory_space<vmem>>, vector<4x8x128xbf16>
    tpu.vector_store %arg4[%c0_11, %c0_12, %c0_13], %16 {strides = array<i32>} : memref<4x8x128xbf16, #tpu.memory_space<vmem>>, vector<4x8x128xbf16>,
    return
  }
  func.func @transform_0(%arg0: i32) -> (i32, i32, i32) {
    %c0_i32 = arith.constant 0 : i32
    %c0_i32_0 = arith.constant 0 : i32
    %c0_i32_1 = arith.constant 0 : i32
    return %arg0, %c0_i32, %c0_i32_0 : i32, i32, i32
  }
  func.func @transform_1(%arg0: i32) -> (i32, i32, i32) {
    %c0_i32 = arith.constant 0 : i32
    %c0_i32_0 = arith.constant 0 : i32
    %c0_i32_1 = arith.constant 0 : i32
    return %arg0, %c0_i32, %c0_i32_0 : i32, i32, i32
  }
  func.func @transform_2(%arg0: i32) -> (i32, i32, i32) {
    %c0_i32 = arith.constant 0 : i32
    %c0_i32_0 = arith.constant 0 : i32
    %c0_i32_1 = arith.constant 0 : i32
    return %arg0, %c0_i32, %c0_i32_0 : i32, i32, i32
  }
  func.func @transform_3(%arg0: i32) -> (i32, i32, i32) {
    %c0_i32 = arith.constant 0 : i32
    %c0_i32_0 = arith.constant 0 : i32
    %c0_i32_1 = arith.constant 0 : i32
    return %arg0, %c0_i32, %c0_i32_0 : i32, i32, i32
  }
}

module attributes {stable_mosaic.version = 11 : i64} {
  func.func @_linear_kernel(%arg0: i32, %arg1: i32, %arg2: memref<16x128xf32, #tpu.memory_space<vmem>>, %arg3: memref<128x384xbf16, #tpu.memory_space<vmem>>, %arg4: memref<1x384xf32, #tpu.memory_space<vmem>>, %arg5: memref<16x384xbf16, #tpu.memory_space<vmem>>, %arg6: memref<16x384xf32, #tpu.memory_space<vmem>>) attributes {dimension_semantics = [#tpu.dimension_semantics<parallel>, #tpu.dimension_semantics<arbitrary>], iteration_bounds = array<i64: 1, 1>, scalar_prefetch = 0 : i64, scratch_operands = 1 : i64, tpu.core_type = #tpu.core_type<tc>, window_params = [{transform_indices = @transform_0, window_bounds = array<i64: 16, 128>}, {transform_indices = @transform_1, window_bounds = array<i64: 128, 384>}, {pipeline_mode = #tpu.pipeline_mode<synchronous>, transform_indices = @transform_2, window_bounds = array<i64: 1, 384>}, {transform_indices = @transform_3, window_bounds = array<i64: 16, 384>}]} {
    %c0_i32 = arith.constant 0 : i32
    %0 = arith.cmpi eq, %arg1, %c0_i32 : i32
    %1 = arith.extui %0 : i1 to i32
    %c0_i32_0 = arith.constant 0 : i32
    %2 = arith.cmpi ne, %1, %c0_i32_0 : i32
    scf.if %2 {
      %cst_10 = arith.constant 0.000000e+00 : f32
      %13 = vector.broadcast %cst_10 : f32 to vector<16x384xf32>
      %c0_11 = arith.constant 0 : index
      %c0_12 = arith.constant 0 : index
      %14 = vector.load %arg6[%c0_11, %c0_12] : memref<16x384xf32, #tpu.memory_space<vmem>>, vector<16x384xf32>
      tpu.vector_store %arg6[%c0_11, %c0_12], %13 {strides = array<i32>} : memref<16x384xf32, #tpu.memory_space<vmem>>, vector<16x384xf32>,
    } else {
    }
    %c0 = arith.constant 0 : index
    %c0_1 = arith.constant 0 : index
    %3 = vector.load %arg6[%c0, %c0_1] : memref<16x384xf32, #tpu.memory_space<vmem>>, vector<16x384xf32>
    %c0_2 = arith.constant 0 : index
    %c0_3 = arith.constant 0 : index
    %4 = vector.load %arg2[%c0_2, %c0_3] : memref<16x128xf32, #tpu.memory_space<vmem>>, vector<16x128xf32>
    %5 = arith.truncf %4 : vector<16x128xf32> to vector<16x128xbf16>
    %c0_4 = arith.constant 0 : index
    %c0_5 = arith.constant 0 : index
    %6 = vector.load %arg3[%c0_4, %c0_5] : memref<128x384xbf16, #tpu.memory_space<vmem>>, vector<128x384xbf16>
    %cst = arith.constant dense<0.000000e+00> : vector<16x384xf32>
    %7 = tpu.matmul %5, %6, %cst {dimension_numbers = #tpu.dot_dimension_numbers<[1], [0], [0], [1], [0, 0, 1, 1], [], []>} : vector<16x128xbf16>, vector<128x384xbf16>, vector<16x384xf32> -> vector<16x384xf32>
    %8 = arith.addf %3, %7 : vector<16x384xf32>
    %c0_6 = arith.constant 0 : index
    %c0_7 = arith.constant 0 : index
    %9 = vector.load %arg6[%c0_6, %c0_7] : memref<16x384xf32, #tpu.memory_space<vmem>>, vector<16x384xf32>
    tpu.vector_store %arg6[%c0_6, %c0_7], %8 {strides = array<i32>} : memref<16x384xf32, #tpu.memory_space<vmem>>, vector<16x384xf32>,
    %c0_i32_8 = arith.constant 0 : i32
    %10 = arith.cmpi eq, %arg1, %c0_i32_8 : i32
    %11 = arith.extui %10 : i1 to i32
    %c0_i32_9 = arith.constant 0 : i32
    %12 = arith.cmpi ne, %11, %c0_i32_9 : i32
    scf.if %12 {
      %c0_10 = arith.constant 0 : index
      %c0_11 = arith.constant 0 : index
      %13 = vector.load %arg6[%c0_10, %c0_11] : memref<16x384xf32, #tpu.memory_space<vmem>>, vector<16x384xf32>
      %c0_12 = arith.constant 0 : index
      %c0_13 = arith.constant 0 : index
      %14 = vector.load %arg4[%c0_12, %c0_13] : memref<1x384xf32, #tpu.memory_space<vmem>>, vector<1x384xf32>
      %15 = vector.broadcast %14 : vector<1x384xf32> to vector<16x384xf32>
      %16 = arith.addf %13, %15 : vector<16x384xf32>
      %17 = arith.truncf %16 : vector<16x384xf32> to vector<16x384xbf16>
      %c0_14 = arith.constant 0 : index
      %c0_15 = arith.constant 0 : index
      %18 = vector.load %arg5[%c0_14, %c0_15] : memref<16x384xbf16, #tpu.memory_space<vmem>>, vector<16x384xbf16>
      tpu.vector_store %arg5[%c0_14, %c0_15], %17 {strides = array<i32>} : memref<16x384xbf16, #tpu.memory_space<vmem>>, vector<16x384xbf16>,
    } else {
    }
    return
  }
  func.func @transform_0(%arg0: i32, %arg1: i32) -> (i32, i32) {
    %c0_i32 = arith.constant 0 : i32
    return %arg0, %arg1 : i32, i32
  }
  func.func @transform_1(%arg0: i32, %arg1: i32) -> (i32, i32) {
    %c0_i32 = arith.constant 0 : i32
    %c0_i32_0 = arith.constant 0 : i32
    return %arg1, %c0_i32 : i32, i32
  }
  func.func @transform_2(%arg0: i32, %arg1: i32) -> (i32, i32) {
    %c0_i32 = arith.constant 0 : i32
    %c0_i32_0 = arith.constant 0 : i32
    %c0_i32_1 = arith.constant 0 : i32
    return %c0_i32, %c0_i32_0 : i32, i32
  }
  func.func @transform_3(%arg0: i32, %arg1: i32) -> (i32, i32) {
    %c0_i32 = arith.constant 0 : i32
    %c0_i32_0 = arith.constant 0 : i32
    return %arg0, %c0_i32 : i32, i32
  }
}

module attributes {stable_mosaic.version = 11 : i64} {
  func.func @_encoder_tail_kernel(%arg0: i32, %arg1: i32, %arg2: memref<16x128xbf16, #tpu.memory_space<vmem>>, %arg3: memref<16x128xf32, #tpu.memory_space<vmem>>, %arg4: memref<128x128xbf16, #tpu.memory_space<vmem>>, %arg5: memref<1x128xf32, #tpu.memory_space<vmem>>, %arg6: memref<1x128xf32, #tpu.memory_space<vmem>>, %arg7: memref<1x128xf32, #tpu.memory_space<vmem>>, %arg8: memref<128x128xbf16, #tpu.memory_space<vmem>>, %arg9: memref<1x128xf32, #tpu.memory_space<vmem>>, %arg10: memref<128x128xbf16, #tpu.memory_space<vmem>>, %arg11: memref<1x128xf32, #tpu.memory_space<vmem>>, %arg12: memref<1x128xf32, #tpu.memory_space<vmem>>, %arg13: memref<1x128xf32, #tpu.memory_space<vmem>>, %arg14: memref<16x128xf32, #tpu.memory_space<vmem>>, %arg15: memref<16x128xf32, #tpu.memory_space<vmem>>, %arg16: memref<16x128xf32, #tpu.memory_space<vmem>>) attributes {dimension_semantics = [#tpu.dimension_semantics<parallel>, #tpu.dimension_semantics<arbitrary>], iteration_bounds = array<i64: 1, 1>, scalar_prefetch = 0 : i64, scratch_operands = 2 : i64, tpu.core_type = #tpu.core_type<tc>, window_params = [{transform_indices = @transform_0, window_bounds = array<i64: 16, 128>}, {transform_indices = @transform_1, window_bounds = array<i64: 16, 128>}, {pipeline_mode = #tpu.pipeline_mode<synchronous>, transform_indices = @transform_2, window_bounds = array<i64: 128, 128>}, {pipeline_mode = #tpu.pipeline_mode<synchronous>, transform_indices = @transform_3, window_bounds = array<i64: 1, 128>}, {pipeline_mode = #tpu.pipeline_mode<synchronous>, transform_indices = @transform_4, window_bounds = array<i64: 1, 128>}, {pipeline_mode = #tpu.pipeline_mode<synchronous>, transform_indices = @transform_5, window_bounds = array<i64: 1, 128>}, {transform_indices = @transform_6, window_bounds = array<i64: 128, 128>}, {transform_indices = @transform_7, window_bounds = array<i64: 1, 128>}, {transform_indices = @transform_8, window_bounds = array<i64: 128, 128>}, {pipeline_mode = #tpu.pipeline_mode<synchronous>, transform_indices = @transform_9, window_bounds = array<i64: 1, 128>}, {pipeline_mode = #tpu.pipeline_mode<synchronous>, transform_indices = @transform_10, window_bounds = array<i64: 1, 128>}, {pipeline_mode = #tpu.pipeline_mode<synchronous>, transform_indices = @transform_11, window_bounds = array<i64: 1, 128>}, {transform_indices = @transform_12, window_bounds = array<i64: 16, 128>}]} {
    %c0_i32 = arith.constant 0 : i32
    %0 = arith.cmpi eq, %arg1, %c0_i32 : i32
    %1 = arith.extui %0 : i1 to i32
    %c0_i32_0 = arith.constant 0 : i32
    %2 = arith.cmpi ne, %1, %c0_i32_0 : i32
    scf.if %2 {
      %c0_16 = arith.constant 0 : index
      %c0_17 = arith.constant 0 : index
      %21 = vector.load %arg2[%c0_16, %c0_17] : memref<16x128xbf16, #tpu.memory_space<vmem>>, vector<16x128xbf16>
      %c0_18 = arith.constant 0 : index
      %c0_19 = arith.constant 0 : index
      %22 = vector.load %arg4[%c0_18, %c0_19] : memref<128x128xbf16, #tpu.memory_space<vmem>>, vector<128x128xbf16>
      %cst_20 = arith.constant dense<0.000000e+00> : vector<16x128xf32>
      %23 = tpu.matmul %21, %22, %cst_20 {dimension_numbers = #tpu.dot_dimension_numbers<[1], [0], [0], [1], [0, 0, 1, 1], [], []>} : vector<16x128xbf16>, vector<128x128xbf16>, vector<16x128xf32> -> vector<16x128xf32>
      %c0_21 = arith.constant 0 : index
      %c0_22 = arith.constant 0 : index
      %24 = vector.load %arg5[%c0_21, %c0_22] : memref<1x128xf32, #tpu.memory_space<vmem>>, vector<1x128xf32>
      %25 = vector.broadcast %24 : vector<1x128xf32> to vector<16x128xf32>
      %26 = arith.addf %23, %25 : vector<16x128xf32>
      %c0_23 = arith.constant 0 : index
      %c0_24 = arith.constant 0 : index
      %27 = vector.load %arg3[%c0_23, %c0_24] : memref<16x128xf32, #tpu.memory_space<vmem>>, vector<16x128xf32>
      %28 = arith.addf %26, %27 : vector<16x128xf32>
      %c0_25 = arith.constant 0 : index
      %c0_26 = arith.constant 0 : index
      %29 = vector.load %arg6[%c0_25, %c0_26] : memref<1x128xf32, #tpu.memory_space<vmem>>, vector<1x128xf32>
      %c0_27 = arith.constant 0 : index
      %c0_28 = arith.constant 0 : index
      %30 = vector.load %arg7[%c0_27, %c0_28] : memref<1x128xf32, #tpu.memory_space<vmem>>, vector<1x128xf32>
      %31 = tpu.iota {dimensions = array<i32: 1>} : vector<16x128xi32>
      %c32_i32 = arith.constant 32 : i32
      %32 = vector.broadcast %c32_i32 : i32 to vector<16x128xi32>
      %33 = arith.cmpi slt, %31, %32 : vector<16x128xi32>
      %cst_29 = arith.constant 0.000000e+00 : f32
      %34 = vector.broadcast %cst_29 : f32 to vector<16x128xf32>
      %35 = arith.select %33, %28, %34 : vector<16x128xi1>, vector<16x128xf32>
      %cst_30 = arith.constant dense<0.000000e+00> : vector<16xf32>
      %36 = vector.multi_reduction <add>, %35, %cst_30 [1] : vector<16x128xf32> to vector<16xf32>
      %37 = vector.shape_cast %36 : vector<16xf32> to vector<16x1xf32>
      %cst_31 = arith.constant 3.125000e-02 : f32
      %38 = vector.broadcast %cst_31 : f32 to vector<16x1xf32>
      %39 = arith.mulf %37, %38 : vector<16x1xf32>
      %40 = vector.broadcast %39 : vector<16x1xf32> to vector<16x128xf32>
      %41 = arith.subf %28, %40 : vector<16x128xf32>
      %cst_32 = arith.constant 0.000000e+00 : f32
      %42 = vector.broadcast %cst_32 : f32 to vector<16x128xf32>
      %43 = arith.select %33, %41, %42 : vector<16x128xi1>, vector<16x128xf32>
      %44 = arith.mulf %43, %43 : vector<16x128xf32>
      %cst_33 = arith.constant dense<0.000000e+00> : vector<16xf32>
      %45 = vector.multi_reduction <add>, %44, %cst_33 [1] : vector<16x128xf32> to vector<16xf32>
      %46 = vector.shape_cast %45 : vector<16xf32> to vector<16x1xf32>
      %cst_34 = arith.constant 3.125000e-02 : f32
      %47 = vector.broadcast %cst_34 : f32 to vector<16x1xf32>
      %48 = arith.mulf %46, %47 : vector<16x1xf32>
      %cst_35 = arith.constant 9.99999974E-6 : f32
      %49 = vector.broadcast %cst_35 : f32 to vector<16x1xf32>
      %50 = arith.addf %48, %49 : vector<16x1xf32>
      %51 = math.rsqrt %50 : vector<16x1xf32>
      %52 = vector.broadcast %51 : vector<16x1xf32> to vector<16x128xf32>
      %53 = arith.mulf %43, %52 : vector<16x128xf32>
      %54 = vector.broadcast %29 : vector<1x128xf32> to vector<16x128xf32>
      %55 = arith.mulf %53, %54 : vector<16x128xf32>
      %56 = vector.broadcast %30 : vector<1x128xf32> to vector<16x128xf32>
      %57 = arith.addf %55, %56 : vector<16x128xf32>
      %c0_36 = arith.constant 0 : index
      %c0_37 = arith.constant 0 : index
      %58 = vector.load %arg15[%c0_36, %c0_37] : memref<16x128xf32, #tpu.memory_space<vmem>>, vector<16x128xf32>
      tpu.vector_store %arg15[%c0_36, %c0_37], %57 {strides = array<i32>} : memref<16x128xf32, #tpu.memory_space<vmem>>, vector<16x128xf32>,
      %cst_38 = arith.constant 0.000000e+00 : f32
      %59 = vector.broadcast %cst_38 : f32 to vector<16x128xf32>
      %c0_39 = arith.constant 0 : index
      %c0_40 = arith.constant 0 : index
      %60 = vector.load %arg16[%c0_39, %c0_40] : memref<16x128xf32, #tpu.memory_space<vmem>>, vector<16x128xf32>
      tpu.vector_store %arg16[%c0_39, %c0_40], %59 {strides = array<i32>} : memref<16x128xf32, #tpu.memory_space<vmem>>, vector<16x128xf32>,
    } else {
    }
    %c0 = arith.constant 0 : index
    %c0_1 = arith.constant 0 : index
    %3 = vector.load %arg15[%c0, %c0_1] : memref<16x128xf32, #tpu.memory_space<vmem>>, vector<16x128xf32>
    %4 = arith.truncf %3 : vector<16x128xf32> to vector<16x128xbf16>
    %c0_2 = arith.constant 0 : index
    %c0_3 = arith.constant 0 : index
    %5 = vector.load %arg8[%c0_2, %c0_3] : memref<128x128xbf16, #tpu.memory_space<vmem>>, vector<128x128xbf16>
    %cst = arith.constant dense<0.000000e+00> : vector<16x128xf32>
    %6 = tpu.matmul %4, %5, %cst {dimension_numbers = #tpu.dot_dimension_numbers<[1], [0], [0], [1], [0, 0, 1, 1], [], []>} : vector<16x128xbf16>, vector<128x128xbf16>, vector<16x128xf32> -> vector<16x128xf32>
    %c0_4 = arith.constant 0 : index
    %c0_5 = arith.constant 0 : index
    %7 = vector.load %arg9[%c0_4, %c0_5] : memref<1x128xf32, #tpu.memory_space<vmem>>, vector<1x128xf32>
    %8 = vector.broadcast %7 : vector<1x128xf32> to vector<16x128xf32>
    %9 = arith.addf %6, %8 : vector<16x128xf32>
    %cst_6 = arith.constant 0.000000e+00 : f32
    %10 = vector.broadcast %cst_6 : f32 to vector<16x128xf32>
    %11 = arith.maximumf %9, %10 : vector<16x128xf32>
    %c0_7 = arith.constant 0 : index
    %c0_8 = arith.constant 0 : index
    %12 = vector.load %arg16[%c0_7, %c0_8] : memref<16x128xf32, #tpu.memory_space<vmem>>, vector<16x128xf32>
    %13 = arith.truncf %11 : vector<16x128xf32> to vector<16x128xbf16>
    %c0_9 = arith.constant 0 : index
    %c0_10 = arith.constant 0 : index
    %14 = vector.load %arg10[%c0_9, %c0_10] : memref<128x128xbf16, #tpu.memory_space<vmem>>, vector<128x128xbf16>
    %cst_11 = arith.constant dense<0.000000e+00> : vector<16x128xf32>
    %15 = tpu.matmul %13, %14, %cst_11 {dimension_numbers = #tpu.dot_dimension_numbers<[1], [0], [0], [1], [0, 0, 1, 1], [], []>} : vector<16x128xbf16>, vector<128x128xbf16>, vector<16x128xf32> -> vector<16x128xf32>
    %16 = arith.addf %12, %15 : vector<16x128xf32>
    %c0_12 = arith.constant 0 : index
    %c0_13 = arith.constant 0 : index
    %17 = vector.load %arg16[%c0_12, %c0_13] : memref<16x128xf32, #tpu.memory_space<vmem>>, vector<16x128xf32>
    tpu.vector_store %arg16[%c0_12, %c0_13], %16 {strides = array<i32>} : memref<16x128xf32, #tpu.memory_space<vmem>>, vector<16x128xf32>,
    %c0_i32_14 = arith.constant 0 : i32
    %18 = arith.cmpi eq, %arg1, %c0_i32_14 : i32
    %19 = arith.extui %18 : i1 to i32
    %c0_i32_15 = arith.constant 0 : i32
    %20 = arith.cmpi ne, %19, %c0_i32_15 : i32
    scf.if %20 {
      %c0_16 = arith.constant 0 : index
      %c0_17 = arith.constant 0 : index
      %21 = vector.load %arg16[%c0_16, %c0_17] : memref<16x128xf32, #tpu.memory_space<vmem>>, vector<16x128xf32>
      %c0_18 = arith.constant 0 : index
      %c0_19 = arith.constant 0 : index
      %22 = vector.load %arg11[%c0_18, %c0_19] : memref<1x128xf32, #tpu.memory_space<vmem>>, vector<1x128xf32>
      %23 = vector.broadcast %22 : vector<1x128xf32> to vector<16x128xf32>
      %24 = arith.addf %21, %23 : vector<16x128xf32>
      %c0_20 = arith.constant 0 : index
      %c0_21 = arith.constant 0 : index
      %25 = vector.load %arg15[%c0_20, %c0_21] : memref<16x128xf32, #tpu.memory_space<vmem>>, vector<16x128xf32>
      %26 = arith.addf %24, %25 : vector<16x128xf32>
      %c0_22 = arith.constant 0 : index
      %c0_23 = arith.constant 0 : index
      %27 = vector.load %arg12[%c0_22, %c0_23] : memref<1x128xf32, #tpu.memory_space<vmem>>, vector<1x128xf32>
      %c0_24 = arith.constant 0 : index
      %c0_25 = arith.constant 0 : index
      %28 = vector.load %arg13[%c0_24, %c0_25] : memref<1x128xf32, #tpu.memory_space<vmem>>, vector<1x128xf32>
      %29 = tpu.iota {dimensions = array<i32: 1>} : vector<16x128xi32>
      %c32_i32 = arith.constant 32 : i32
      %30 = vector.broadcast %c32_i32 : i32 to vector<16x128xi32>
      %31 = arith.cmpi slt, %29, %30 : vector<16x128xi32>
      %cst_26 = arith.constant 0.000000e+00 : f32
      %32 = vector.broadcast %cst_26 : f32 to vector<16x128xf32>
      %33 = arith.select %31, %26, %32 : vector<16x128xi1>, vector<16x128xf32>
      %cst_27 = arith.constant dense<0.000000e+00> : vector<16xf32>
      %34 = vector.multi_reduction <add>, %33, %cst_27 [1] : vector<16x128xf32> to vector<16xf32>
      %35 = vector.shape_cast %34 : vector<16xf32> to vector<16x1xf32>
      %cst_28 = arith.constant 3.125000e-02 : f32
      %36 = vector.broadcast %cst_28 : f32 to vector<16x1xf32>
      %37 = arith.mulf %35, %36 : vector<16x1xf32>
      %38 = vector.broadcast %37 : vector<16x1xf32> to vector<16x128xf32>
      %39 = arith.subf %26, %38 : vector<16x128xf32>
      %cst_29 = arith.constant 0.000000e+00 : f32
      %40 = vector.broadcast %cst_29 : f32 to vector<16x128xf32>
      %41 = arith.select %31, %39, %40 : vector<16x128xi1>, vector<16x128xf32>
      %42 = arith.mulf %41, %41 : vector<16x128xf32>
      %cst_30 = arith.constant dense<0.000000e+00> : vector<16xf32>
      %43 = vector.multi_reduction <add>, %42, %cst_30 [1] : vector<16x128xf32> to vector<16xf32>
      %44 = vector.shape_cast %43 : vector<16xf32> to vector<16x1xf32>
      %cst_31 = arith.constant 3.125000e-02 : f32
      %45 = vector.broadcast %cst_31 : f32 to vector<16x1xf32>
      %46 = arith.mulf %44, %45 : vector<16x1xf32>
      %cst_32 = arith.constant 9.99999974E-6 : f32
      %47 = vector.broadcast %cst_32 : f32 to vector<16x1xf32>
      %48 = arith.addf %46, %47 : vector<16x1xf32>
      %49 = math.rsqrt %48 : vector<16x1xf32>
      %50 = vector.broadcast %49 : vector<16x1xf32> to vector<16x128xf32>
      %51 = arith.mulf %41, %50 : vector<16x128xf32>
      %52 = vector.broadcast %27 : vector<1x128xf32> to vector<16x128xf32>
      %53 = arith.mulf %51, %52 : vector<16x128xf32>
      %54 = vector.broadcast %28 : vector<1x128xf32> to vector<16x128xf32>
      %55 = arith.addf %53, %54 : vector<16x128xf32>
      %c0_33 = arith.constant 0 : index
      %c0_34 = arith.constant 0 : index
      %56 = vector.load %arg14[%c0_33, %c0_34] : memref<16x128xf32, #tpu.memory_space<vmem>>, vector<16x128xf32>
      tpu.vector_store %arg14[%c0_33, %c0_34], %55 {strides = array<i32>} : memref<16x128xf32, #tpu.memory_space<vmem>>, vector<16x128xf32>,
    } else {
    }
    return
  }
  func.func @transform_0(%arg0: i32, %arg1: i32) -> (i32, i32) {
    %c0_i32 = arith.constant 0 : i32
    %c0_i32_0 = arith.constant 0 : i32
    return %arg0, %c0_i32 : i32, i32
  }
  func.func @transform_1(%arg0: i32, %arg1: i32) -> (i32, i32) {
    %c0_i32 = arith.constant 0 : i32
    %c0_i32_0 = arith.constant 0 : i32
    return %arg0, %c0_i32 : i32, i32
  }
  func.func @transform_2(%arg0: i32, %arg1: i32) -> (i32, i32) {
    %c0_i32 = arith.constant 0 : i32
    %c0_i32_0 = arith.constant 0 : i32
    %c0_i32_1 = arith.constant 0 : i32
    return %c0_i32, %c0_i32_0 : i32, i32
  }
  func.func @transform_3(%arg0: i32, %arg1: i32) -> (i32, i32) {
    %c0_i32 = arith.constant 0 : i32
    %c0_i32_0 = arith.constant 0 : i32
    %c0_i32_1 = arith.constant 0 : i32
    return %c0_i32, %c0_i32_0 : i32, i32
  }
  func.func @transform_4(%arg0: i32, %arg1: i32) -> (i32, i32) {
    %c0_i32 = arith.constant 0 : i32
    %c0_i32_0 = arith.constant 0 : i32
    %c0_i32_1 = arith.constant 0 : i32
    return %c0_i32, %c0_i32_0 : i32, i32
  }
  func.func @transform_5(%arg0: i32, %arg1: i32) -> (i32, i32) {
    %c0_i32 = arith.constant 0 : i32
    %c0_i32_0 = arith.constant 0 : i32
    %c0_i32_1 = arith.constant 0 : i32
    return %c0_i32, %c0_i32_0 : i32, i32
  }
  func.func @transform_6(%arg0: i32, %arg1: i32) -> (i32, i32) {
    %c0_i32 = arith.constant 0 : i32
    %c0_i32_0 = arith.constant 0 : i32
    return %c0_i32, %arg1 : i32, i32
  }
  func.func @transform_7(%arg0: i32, %arg1: i32) -> (i32, i32) {
    %c0_i32 = arith.constant 0 : i32
    %c0_i32_0 = arith.constant 0 : i32
    return %c0_i32, %arg1 : i32, i32
  }
  func.func @transform_8(%arg0: i32, %arg1: i32) -> (i32, i32) {
    %c0_i32 = arith.constant 0 : i32
    %c0_i32_0 = arith.constant 0 : i32
    return %arg1, %c0_i32 : i32, i32
  }
  func.func @transform_9(%arg0: i32, %arg1: i32) -> (i32, i32) {
    %c0_i32 = arith.constant 0 : i32
    %c0_i32_0 = arith.constant 0 : i32
    %c0_i32_1 = arith.constant 0 : i32
    return %c0_i32, %c0_i32_0 : i32, i32
  }
  func.func @transform_10(%arg0: i32, %arg1: i32) -> (i32, i32) {
    %c0_i32 = arith.constant 0 : i32
    %c0_i32_0 = arith.constant 0 : i32
    %c0_i32_1 = arith.constant 0 : i32
    return %c0_i32, %c0_i32_0 : i32, i32
  }
  func.func @transform_11(%arg0: i32, %arg1: i32) -> (i32, i32) {
    %c0_i32 = arith.constant 0 : i32
    %c0_i32_0 = arith.constant 0 : i32
    %c0_i32_1 = arith.constant 0 : i32
    return %c0_i32, %c0_i32_0 : i32, i32
  }
  func.func @transform_12(%arg0: i32, %arg1: i32) -> (i32, i32) {
    %c0_i32 = arith.constant 0 : i32
    %c0_i32_0 = arith.constant 0 : i32
    return %arg0, %c0_i32 : i32, i32
  }
}

module attributes {stable_mosaic.version = 11 : i64} {
  func.func @_linear_kernel(%arg0: i32, %arg1: i32, %arg2: memref<16x256xf32, #tpu.memory_space<vmem>>, %arg3: memref<256x128xbf16, #tpu.memory_space<vmem>>, %arg4: memref<1x128xf32, #tpu.memory_space<vmem>>, %arg5: memref<16x128xf32, #tpu.memory_space<vmem>>, %arg6: memref<16x128xf32, #tpu.memory_space<vmem>>) attributes {dimension_semantics = [#tpu.dimension_semantics<parallel>, #tpu.dimension_semantics<arbitrary>], iteration_bounds = array<i64: 1, 1>, scalar_prefetch = 0 : i64, scratch_operands = 1 : i64, tpu.core_type = #tpu.core_type<tc>, window_params = [{transform_indices = @transform_0, window_bounds = array<i64: 16, 256>}, {transform_indices = @transform_1, window_bounds = array<i64: 256, 128>}, {pipeline_mode = #tpu.pipeline_mode<synchronous>, transform_indices = @transform_2, window_bounds = array<i64: 1, 128>}, {transform_indices = @transform_3, window_bounds = array<i64: 16, 128>}]} {
    %c0_i32 = arith.constant 0 : i32
    %0 = arith.cmpi eq, %arg1, %c0_i32 : i32
    %1 = arith.extui %0 : i1 to i32
    %c0_i32_0 = arith.constant 0 : i32
    %2 = arith.cmpi ne, %1, %c0_i32_0 : i32
    scf.if %2 {
      %cst_10 = arith.constant 0.000000e+00 : f32
      %13 = vector.broadcast %cst_10 : f32 to vector<16x128xf32>
      %c0_11 = arith.constant 0 : index
      %c0_12 = arith.constant 0 : index
      %14 = vector.load %arg6[%c0_11, %c0_12] : memref<16x128xf32, #tpu.memory_space<vmem>>, vector<16x128xf32>
      tpu.vector_store %arg6[%c0_11, %c0_12], %13 {strides = array<i32>} : memref<16x128xf32, #tpu.memory_space<vmem>>, vector<16x128xf32>,
    } else {
    }
    %c0 = arith.constant 0 : index
    %c0_1 = arith.constant 0 : index
    %3 = vector.load %arg6[%c0, %c0_1] : memref<16x128xf32, #tpu.memory_space<vmem>>, vector<16x128xf32>
    %c0_2 = arith.constant 0 : index
    %c0_3 = arith.constant 0 : index
    %4 = vector.load %arg2[%c0_2, %c0_3] : memref<16x256xf32, #tpu.memory_space<vmem>>, vector<16x256xf32>
    %5 = arith.truncf %4 : vector<16x256xf32> to vector<16x256xbf16>
    %c0_4 = arith.constant 0 : index
    %c0_5 = arith.constant 0 : index
    %6 = vector.load %arg3[%c0_4, %c0_5] : memref<256x128xbf16, #tpu.memory_space<vmem>>, vector<256x128xbf16>
    %cst = arith.constant dense<0.000000e+00> : vector<16x128xf32>
    %7 = tpu.matmul %5, %6, %cst {dimension_numbers = #tpu.dot_dimension_numbers<[1], [0], [0], [1], [0, 0, 1, 1], [], []>} : vector<16x256xbf16>, vector<256x128xbf16>, vector<16x128xf32> -> vector<16x128xf32>
    %8 = arith.addf %3, %7 : vector<16x128xf32>
    %c0_6 = arith.constant 0 : index
    %c0_7 = arith.constant 0 : index
    %9 = vector.load %arg6[%c0_6, %c0_7] : memref<16x128xf32, #tpu.memory_space<vmem>>, vector<16x128xf32>
    tpu.vector_store %arg6[%c0_6, %c0_7], %8 {strides = array<i32>} : memref<16x128xf32, #tpu.memory_space<vmem>>, vector<16x128xf32>,
    %c0_i32_8 = arith.constant 0 : i32
    %10 = arith.cmpi eq, %arg1, %c0_i32_8 : i32
    %11 = arith.extui %10 : i1 to i32
    %c0_i32_9 = arith.constant 0 : i32
    %12 = arith.cmpi ne, %11, %c0_i32_9 : i32
    scf.if %12 {
      %c0_10 = arith.constant 0 : index
      %c0_11 = arith.constant 0 : index
      %13 = vector.load %arg6[%c0_10, %c0_11] : memref<16x128xf32, #tpu.memory_space<vmem>>, vector<16x128xf32>
      %c0_12 = arith.constant 0 : index
      %c0_13 = arith.constant 0 : index
      %14 = vector.load %arg4[%c0_12, %c0_13] : memref<1x128xf32, #tpu.memory_space<vmem>>, vector<1x128xf32>
      %15 = vector.broadcast %14 : vector<1x128xf32> to vector<16x128xf32>
      %16 = arith.addf %13, %15 : vector<16x128xf32>
      %c0_14 = arith.constant 0 : index
      %c0_15 = arith.constant 0 : index
      %17 = vector.load %arg5[%c0_14, %c0_15] : memref<16x128xf32, #tpu.memory_space<vmem>>, vector<16x128xf32>
      tpu.vector_store %arg5[%c0_14, %c0_15], %16 {strides = array<i32>} : memref<16x128xf32, #tpu.memory_space<vmem>>, vector<16x128xf32>,
    } else {
    }
    return
  }
  func.func @transform_0(%arg0: i32, %arg1: i32) -> (i32, i32) {
    %c0_i32 = arith.constant 0 : i32
    return %arg0, %arg1 : i32, i32
  }
  func.func @transform_1(%arg0: i32, %arg1: i32) -> (i32, i32) {
    %c0_i32 = arith.constant 0 : i32
    %c0_i32_0 = arith.constant 0 : i32
    return %arg1, %c0_i32 : i32, i32
  }
  func.func @transform_2(%arg0: i32, %arg1: i32) -> (i32, i32) {
    %c0_i32 = arith.constant 0 : i32
    %c0_i32_0 = arith.constant 0 : i32
    %c0_i32_1 = arith.constant 0 : i32
    return %c0_i32, %c0_i32_0 : i32, i32
  }
  func.func @transform_3(%arg0: i32, %arg1: i32) -> (i32, i32) {
    %c0_i32 = arith.constant 0 : i32
    %c0_i32_0 = arith.constant 0 : i32
    return %arg0, %c0_i32 : i32, i32
  }
}

</mosaic_0001>

<bundles_post_ra>
// kernel: tpu_custom_call.1
= control target key start
LH: loop header
LB: loop body
LE: loop exit
PB: predicated region body
PF: predicated region fallthrough
CT: control target
= control target key end

     0   :  { %8 = vsyncpa [#allocation4], 0  ;;  %s834_s0 = inlined_call_operand.hbm [shape: f32[16,256], index: 0, kind: input, shape index: {}]   ;;  %s835_s1 = inlined_call_operand.hbm [shape: f32[256,128], index: 1, kind: input, shape index: {}]   ;;  %s836_s2 = inlined_call_operand.vmem [shape: f32[1,128], index: 2, kind: input, shape index: {}]   ;;  %s837_s3 = inlined_call_operand.hbm [shape: f32[16,128], index: 3, kind: output, shape index: {}]  }
   0x1   :  { %10 = vsyncpa [#allocation4 + $0x1], 0 }
   0x2   :  { %11 = vsyncpa [#allocation7], 0 }
   0x3   :  { %13 = vsyncpa [#allocation7 + $0x1], 0 }
   0x4   :  { %14 = vsyncpa [#allocation5], 0  ;;  %s695_s12 = smov 0   ;;  %s697_s13 = smov 0  }
   0x5   :  { %s699_s14 = smov 0   ;;  %s701_s15 = smov 0  }
   0x6   :  { %s703_s16 = smov 0   ;;  %s705_s17 = smov 0  }
   0x7 LB: > { %s412_s18 = sadd.s32 4294967295, %s666_s17   ;;  %s29_s19 = sadd.s32 1, %s662_s16  ;;  %s666_s17 = sphi %s705_s17, %s20_s17   ;;  %s662_s16 = sphi %s703_s16, %s845_s16   ;;  %s658_s15 = sphi %s701_s15, %s844_s15   ;;  %s654_s14 = sphi %s699_s14, %s843_s14   ;;  %s650_s13 = sphi %s697_s13, %s842_s13   ;;  %s646_s12 = sphi %s695_s12, %s841_s12  }
   0x8   : > { %p30_p0 = scmp.ge.s32.totalorder %s29_s19, 2  ;;  %s41_s20 = sadd.s32 1, %s654_s14 }
   0x9   : > { %p48_p1 = scmp.ne.s32.totalorder %s654_s14, %s650_s13  ;;  %p49_p2 = scmp.eq.s32.totalorder %s666_s17, 0 }
   0xa   : > { %s847_s19 = smov (%p30_p0, %s29_s19), 0  ;;  %p54_p4 = scmp.ne.s32.totalorder %s650_s13, %s646_s12 }
   0xb   : > { %p731_p3 = por %p49_p2, %p48_p1  ;;  %s37_s22 = ssub.s32 %s662_s16, %s847_s19 }
   0xc   : > { %p55_p5 = scmp.eq.s32.totalorder %s412_s18, 0  ;;  %p39_p6 = scmp.eq.s32.totalorder %s37_s22, 0 }
   0xd   : > { %p461_p8 = scmp.lt.s32.totalorder %s666_s17, 2  ;;  %s749_s25 = sand.u32 1, %s654_s14  }
   0xe   : > { %p740_p7 = por %p55_p5, %p54_p4  ;;  %s416_s26 = sshll.u32 %s662_s16, 3 }
   0xf   : > { %s746_s24 = scalar_select %p39_p6, %s654_s14, %s41_s20  }
  0x10   : > { %s415_s27 = sshll.u32 %s749_s25, 4  ;;  %s165_s30 = scalar_lea.hbm %s834_s0, %s416_s26 }
  0x11   : > { %s166_s4 = sshll.u32 %s165_s30, 4  ;;  %s158_s5 = scalar_lea.vmem [#allocation3], %s415_s27  ;;  %s167_s4 = int_to_ptr.hbm [resolvable:$true] %s166_s4 }
  0x12   : > { %s168_s6 = sshll.u32 %s158_s5, 4  ;;  %p758_p9 = pnand %p461_p8, %p731_p3  ;;  %s169_s6 = int_to_ptr.vmem [resolvable:$true] %s168_s6 }
  0x13   : > { %p420_p10 = scmp.ge.s32.totalorder %s666_s17, 1  ;;  %s155_s8 = scalar_lea.sflag [#allocation4], %s749_s25 }
  0x14   : > { %s668_s9 = smov 256   ;;  %s669_s10 = smov 128  }
  0x15   : > { %s670_s11 = smov 8   ;;  %p198_p11 = scmp.lt.s32.totalorder %s666_s17, 3 }
  0x16   : > { %457 = dma.hbm_to_vmem [thread:$0]  (!%p758_p9), %s167_s4, 256, %s169_s6, %s155_s8, %s668_s9, %s669_s10, %s670_s11  }
  0x17   : > { %s417_s12 = sshll.u32 %s749_s25, 7  ;;  %s429_s20 = sshll.u32 %s662_s16, 7 }
  0x18   : > { %p199_p12 = pnand %p420_p10, %p198_p11  ;;  %s187_s26 = scalar_lea.hbm %s835_s1, %s429_s20 }
  0x19   : > { %s182_s27 = scalar_lea.vmem [#allocation6], %s417_s12  ;;  %s188_s29 = sshll.u32 %s187_s26, 4  ;;  %s189_s29 = int_to_ptr.hbm [resolvable:$true] %s188_s29 }
  0x1a   : > { %s190_s28 = sshll.u32 %s182_s27, 4  ;;  %s179_s30 = scalar_lea.sflag [#allocation7], %s749_s25  ;;  %s191_s28 = int_to_ptr.vmem [resolvable:$true] %s190_s28 }
  0x1b   : > { %460 = dma.hbm_to_vmem [thread:$0]  (!%p758_p9), %s189_s29, 2048, %s191_s28, %s179_s30, %s669_s10, %s669_s10, %s670_s11  }
  0x1c   : > { %202 = sbr.rel (%p199_p12) target bundleno = 225 (0xe1), region = 32  ;;  %s204_s4 = sand.u32 (!%p199_p12), 1, %s650_s13  }
  0x1d   : > { %s421_s5 = sshll.u32 (!%p199_p12), %s204_s4, 4  ;;  %s205_s6 = scalar_lea.sflag (!%p199_p12), [#allocation4], %s204_s4 }
  0x1e   : > { %s776_s8 = scalar_lea.vmem (!%p199_p12), [#allocation3], %s421_s5 }
  0x21   : > { %633 = dma.done.wait (%p740_p7), %s205_s6, 256  }
  0x22   : > { %635 = vsyncadd (%p740_p7), %s205_s6, 4294967040  ;;  %s422_s9 = sshll.u32 %s204_s4, 7  ;;  %s215_s12 = scalar_lea.sflag [#allocation7], %s204_s4 }
  0x23   : > { %s782_s20 = scalar_lea.vmem [#allocation6], %s422_s9 }
  0x24   : > { %637 = dma.done.wait (%p740_p7), %s215_s12, 2048  }
  0x25   : > { %639 = vsyncadd (%p740_p7), %s215_s12, 4294965248  ;;  %p423_p13 = scmp.ne.s32.totalorder %s658_s15, 0 }
  0x27   : > { %248 = sbr.rel (%p423_p13) target bundleno = 47 (0x2f), region = 44 }
  0x2c   : > { %v671_v0 = vmov 0.0  }
  0x2d   : > { %249 = vst [vmem:[#allocation2] sm:$0xff] %v671_v0 }
  0x2e   : > { %250 = vst [vmem:[#allocation2 + $0x8] sm:$0xff] %v671_v0 }
  0x2f PF: > { %v270_v1 = vld [vmem:[%s782_s20 + $0x78] sm:$0xff]  ;;  %v269_v2 = vld [vmem:[%s782_s20 + $0x70] sm:$0xff]  ;;  %v268_v3 = vld [vmem:[%s782_s20 + $0x68] sm:$0xff]  ;;  %p424_p0 = scmp.ne.s32.totalorder %s658_s15, 1 }
  0x30   : > { %271 = vmatpush.msra.mxu0 %v270_v1  ;;  %430 = vmatpush.msra.mxu1 %v270_v1  ;;  %v267_v4 = vld [vmem:[%s782_s20 + $0x60] sm:$0xff]  ;;  %v266_v5 = vld [vmem:[%s782_s20 + $0x58] sm:$0xff]  ;;  %v265_v6 = vld [vmem:[%s782_s20 + $0x50] sm:$0xff] }
  0x31   : > { %v264_v7 = vld [vmem:[%s782_s20 + $0x48] sm:$0xff]  ;;  %v263_v8 = vld [vmem:[%s782_s20 + $0x40] sm:$0xff]  ;;  %v262_v9 = vld [vmem:[%s782_s20 + $0x38] sm:$0xff] }
  0x32   : > { %272 = vmatpush.msra.mxu0 %v269_v2  ;;  %431 = vmatpush.msra.mxu1 %v269_v2  ;;  %v261_v10 = vld [vmem:[%s782_s20 + $0x30] sm:$0xff]  ;;  %v260_v11 = vld [vmem:[%s782_s20 + $0x28] sm:$0xff]  ;;  %v259_v12 = vld [vmem:[%s782_s20 + $0x20] sm:$0xff] }
  0x33   : > { %v258_v13 = vld [vmem:[%s782_s20 + $0x18] sm:$0xff]  ;;  %v257_v14 = vld [vmem:[%s782_s20 + $0x10] sm:$0xff]  ;;  %v256_v15 = vld [vmem:[%s782_s20 + $0x8] sm:$0xff] }
  0x34   : > { %273 = vmatpush.msra.mxu0 %v268_v3  ;;  %432 = vmatpush.msra.mxu1 %v268_v3  ;;  %v255_v16 = vld [vmem:[%s782_s20] sm:$0xff]  ;;  %v254_v18 = vld [vmem:[%s776_s8 + $0x8] sm:$0xff]  ;;  %v251_v19 = vld [vmem:[#allocation2] sm:$0xff] }
  0x35   : > { %v253_v17 = vld [vmem:[%s776_s8] sm:$0xff]  ;;  %v252_v20 = vld [vmem:[#allocation2 + $0x8] sm:$0xff] }
  0x36   : > { %274 = vmatpush.msra.mxu0 %v267_v4  ;;  %433 = vmatpush.msra.mxu1 %v267_v4 }
  0x38   : > { %275 = vmatpush.msra.mxu0 %v266_v5  ;;  %434 = vmatpush.msra.mxu1 %v266_v5 }
  0x3a   : > { %276 = vmatpush.msra.mxu0 %v265_v6  ;;  %435 = vmatpush.msra.mxu1 %v265_v6 }
  0x3c   : > { %277 = vmatpush.msra.mxu0 %v264_v7  ;;  %436 = vmatpush.msra.mxu1 %v264_v7 }
  0x3e   : > { %278 = vmatpush.msra.mxu0 %v263_v8  ;;  %437 = vmatpush.msra.mxu1 %v263_v8 }
  0x40   : > { %279 = vmatpush.msra.mxu0 %v262_v9  ;;  %438 = vmatpush.msra.mxu1 %v262_v9 }
  0x42   : > { %280 = vmatpush.msra.mxu0 %v261_v10  ;;  %439 = vmatpush.msra.mxu1 %v261_v10 }
  0x44   : > { %281 = vmatpush.msra.mxu0 %v260_v11  ;;  %440 = vmatpush.msra.mxu1 %v260_v11 }
  0x46   : > { %282 = vmatpush.msra.mxu0 %v259_v12  ;;  %441 = vmatpush.msra.mxu1 %v259_v12 }
  0x48   : > { %283 = vmatpush.msra.mxu0 %v258_v13  ;;  %442 = vmatpush.msra.mxu1 %v258_v13 }
  0x4a   : > { %284 = vmatpush.msra.mxu0 %v257_v14  ;;  %443 = vmatpush.msra.mxu1 %v257_v14 }
  0x4c   : > { %285 = vmatpush.msra.mxu0 %v256_v15  ;;  %444 = vmatpush.msra.mxu1 %v256_v15 }
  0x4e   : > { %286 = vmatpush.msra.mxu0 %v255_v16  ;;  %445 = vmatpush.msra.mxu1 %v255_v16 }
  0x4f   : > { %287 = vmatmul.f32.vlgmr.msra.gmra.mxu0 %v253_v17  ;;  %290 = vmatmul.f32.vlgmr.msra.gmra.mxu1 %v254_v18 }
  0xcc   : > { %v288_v21 = vpop.f32.mrf.mxu0  ;;  %v291_v22 = vpop.f32.mrf.mxu1  ;;  %301 = sbr.rel (%p424_p0) target bundleno = 219 (0xdb), region = 48 }
  0xcd   : > { %v294_v23 = vadd.f32 %v288_v21, %v251_v19  ;;  %v295_v24 = vadd.f32 %v291_v22, %v252_v20 }
  0xcf   : > { %296 = vst [vmem:[#allocation2] sm:$0xff] %v294_v23 }
  0xd0   : > { %297 = vst [vmem:[#allocation2 + $0x8] sm:$0xff] %v295_v24 }
  0xd1   : > { %v519_v26 = vld [vmem:[%s836_s2] ss:$0 sm:$0xff] }
  0xd6   : > { %v302_v25 = vld [vmem:[#allocation2] sm:$0xff] }
  0xd7   : > { %v303_v27 = vld [vmem:[#allocation2 + $0x8] sm:$0xff]  ;;  %v308_v28 = vadd.f32 %v519_v26, %v302_v25 }
  0xd8   : > { %v309_v29 = vadd.f32 %v519_v26, %v303_v27 }
  0xd9   : > { %310 = vst [vmem:[#allocation8] sm:$0xff] %v308_v28 }
  0xda   : > { %311 = vst [vmem:[#allocation8 + $0x8] sm:$0xff] %v309_v29 }
  0xdb PF: > { %p462_p1 = scmp.eq.s32.totalorder %s412_s18, 1  ;;  %s322_s11 = sshll.u32 %s837_s3, 4  ;;  %s323_s11 = int_to_ptr.hbm [resolvable:$true] %s322_s11 }
  0xdc   : > { %s672_s15 = smov [#allocation8]   ;;  %s673_s21 = smov 128  }
  0xdd   : > { %s320_s22 = sshll.u32 %s672_s15, 4  ;;  %s674_s26 = smov 8   ;;  %s321_s22 = int_to_ptr.vmem [resolvable:$true] %s320_s22 }
  0xde   : > { %451 = dma.vmem_to_hbm [thread:$0]  (%p462_p1), %s321_s22, 256, %s323_s11, [#allocation5], %s673_s21, %s673_s21, %s674_s26  }
  0xdf   : > { %641 = dma.done.wait (%p462_p1), [#allocation5], 256  }
  0xe0   : > { %643 = vsyncadd (%p462_p1), [#allocation5], 4294967040 }
  0xe1 PF: > { %s20_s17 = sadd.s32 1, %s666_s17   ;;  %s841_s12 = smov %s650_s13 }
  0xe2   : > { %p17_p2 = scmp.ge.s32.totalorder %s20_s17, 4   ;;  %s842_s13 = smov %s654_s14 }
  0xe3   : > { %s843_s14 = smov %s746_s24  ;;  %s844_s15 = smov %s662_s16 }
  0xe4   : > { %s845_s16 = smov %s847_s19  ;;  %19 = sbr.rel (!%p17_p2) target bundleno = 7 (0x7), region = 91 }
  0xe9   :  { %339 = vsyncpa [#allocation4], 1 }
  0xea   :  { %341 = vsyncpa [#allocation4 + $0x1], 1 }
  0xeb   :  { %342 = vsyncpa [#allocation7], 1 }
  0xec   :  { %344 = vsyncpa [#allocation7 + $0x1], 1 }
  0xed   :  { %345 = vsyncpa [#allocation5], 1 }
  0xee   :  { %347 = vsyncpa [#allocation5 + $0x1], 1 }

// kernel: attention_model_forward.8
= control target key start
LH: loop header
LB: loop body
LE: loop exit
PB: predicated region body
PF: predicated region fallthrough
CT: control target
= control target key end

     0   :  { %s579_s12 = smov 0   ;;  %s620_s0 = inlined_call_operand.vmem [shape: bf16[8,8,128], index: 0, kind: input, shape index: {}]   ;;  %s621_s1 = inlined_call_operand.vmem [shape: bf16[8,8,128], index: 1, kind: input, shape index: {}]   ;;  %s622_s2 = inlined_call_operand.vmem [shape: bf16[8,8,128], index: 2, kind: input, shape index: {}]   ;;  %s623_s3 = inlined_call_operand.vmem [shape: bf16[8,8,128], index: 3, kind: output, shape index: {}]  }
   0x1 LB: > { %s497_s13 = sadd.s32 4294967295, %s557_s12   ;;  %p501_p0 = scmp.ge.s32.totalorder %s557_s12, 1  ;;  %s557_s12 = sphi %s579_s12, %s13_s12  }
   0x2   : > { %p160_p1 = scmp.lt.s32.totalorder %s557_s12, 3 }
   0x4   : > { %p161_p2 = pnand %p501_p0, %p160_p1 }
   0x5   : > { %s502_s14 = sshll.u32 (!%p161_p2), %s497_s13, 2 }
   0x6   : > { %164 = sbr.rel (%p161_p2) target bundleno = 558 (0x22e), region = 32  ;;  %p195_p3 = scmp.lt.s32.totalorder (!%p161_p2), %s502_s14, 7 }
   0xb   : > { %s625_s14 = smov (!%p195_p3, %s502_s14), 7  ;;  %vm283_vm0 = vcmask 64512   ;;  %vm335_vm1 = vcmask 1043456  }
   0xc   : > { %s587_s15 = sshll.u32 %s625_s14, 2 }
   0xd   : > { %s204_s18 = scalar_lea.vmem %s621_s1, %s587_s15  ;;  %s198_s21 = scalar_lea.vmem %s620_s0, %s587_s15 }
   0xe   : > { %v223_v0 = vld [vmem:[%s204_s18] sm:$0xf]  ;;  %v225_v1 = vld [vmem:[%s204_s18 + $0x8] sm:$0xf]  ;;  %v226_v2 = vld [vmem:[%s204_s18 + $0xc] sm:$0xf]  ;;  %s210_s24 = scalar_lea.vmem %s622_s2, %s587_s15  ;;  %s216_s27 = scalar_lea.vmem %s623_s3, %s587_s15 }
   0xf   : > { %238 = vmatpush.bf16.xpose.msra.mxu0 %v223_v0  ;;  %264 = vmatpush.bf16.xpose.msra.mxu2 %v225_v1  ;;  %v224_v3 = vld [vmem:[%s204_s18 + $0x4] sm:$0xf]  ;;  %v219_v4 = vld [vmem:[%s198_s21] sm:$0xf]  ;;  %v221_v5 = vld [vmem:[%s198_s21 + $0x8] sm:$0xf] }
  0x10   : > { %277 = vmatpush.bf16.xpose.msra.mxu3 %v226_v2  ;;  %251 = vmatpush.bf16.xpose.msra.mxu1 %v224_v3  ;;  %v222_v6 = vld [vmem:[%s198_s21 + $0xc] sm:$0xf]  ;;  %v220_v7 = vld [vmem:[%s198_s21 + $0x4] sm:$0xf]  ;;  %v227_v40 = vld [vmem:[%s210_s24] sm:$0xf] }
  0x11   : > { %v337_v41 = vsel %vm335_vm1, %v227_v40, 0  ;;  %v229_v42 = vld [vmem:[%s210_s24 + $0x8] sm:$0xf]  ;;  %v228_v44 = vld [vmem:[%s210_s24 + $0x4] sm:$0xf] }
  0x12   : > { %v375_v43 = vsel %vm335_vm1, %v229_v42, 0  ;;  %v356_v45 = vsel %vm335_vm1, %v228_v44, 0  ;;  %v230_v46 = vld [vmem:[%s210_s24 + $0xc] sm:$0xf] }
  0x13   : > { %v394_v47 = vsel %vm335_vm1, %v230_v46, 0 }
  0x16   : > { %239 = vmatmul.bf16.vlgmr.msra.gmra.mxu0 %v219_v4  ;;  %265 = vmatmul.bf16.vlgmr.msra.gmra.mxu2 %v221_v5 }
  0x17   : > { %278 = vmatmul.bf16.vlgmr.msra.gmra.mxu3 %v222_v6  ;;  %252 = vmatmul.bf16.vlgmr.msra.gmra.mxu1 %v220_v7 }
  0x18   : > { %346 = vmatpush.bf16.msrb.mxu0 %v337_v41  ;;  %384 = vmatpush.bf16.msrb.mxu2 %v375_v43 }
  0x19   : > { %365 = vmatpush.bf16.msrb.mxu1 %v356_v45  ;;  %403 = vmatpush.bf16.msrb.mxu3 %v394_v47 }
  0x93   : > { %v240_v8 = vpop.f32.mrf.mxu0 }
  0x94   : > { %v284_v9 = vsel %vm283_vm0, %v240_v8, -inf  ;;  %v253_v10 = vpop.f32.mrf.mxu1 }
  0x95   : > { %285 = vmax.xlane.f32.xlu1 %v284_v9  ;;  %v287_v14 = vsel %vm283_vm0, %v253_v10, -inf }
  0x99   : > { %v266_v11 = vpop.f32.mrf.mxu2 }
  0x9a   : > { %v279_v12 = vpop.f32.mrf.mxu3  ;;  %v290_v13 = vsel %vm283_vm0, %v266_v11, -inf }
  0x9b   : > { %291 = vmax.xlane.f32.xlu0 %v290_v13  ;;  %v242_v15 = vpop.f32.mrf.mxu0  ;;  %v293_v17 = vsel %vm283_vm0, %v279_v12, -inf }
  0x9c   : > { %v255_v16 = vpop.f32.mrf.mxu1 }
  0x9d   : > { %288 = vmax.xlane.f32.xlu1 %v287_v14 }
  0xa1   : > { %v268_v18 = vpop.f32.mrf.mxu2 }
  0xa2   : > { %v281_v19 = vpop.f32.mrf.mxu3 }
  0xa3   : > { %294 = vmax.xlane.f32.xlu0 %v293_v17 }
 0x108   : > { %v286_v20 = vpop.xlane.xlu1 %285 }
 0x109   : > { %v296_v21 = vsub.f32 %v240_v8, %v286_v20 }
 0x10b   : > { %v300_v22 = vmul.f32 1.442695, %v296_v21 }
 0x10d   : > { %535 = vpow2.f32 %v300_v22 }
 0x10e   : > { %v292_v23 = vpop.xlane.xlu0 %291 }
 0x10f   : > { %v298_v24 = vsub.f32 %v266_v11, %v292_v23 }
 0x110   : > { %v289_v25 = vpop.xlane.xlu1 %288 }
 0x111   : > { %v304_v26 = vmul.f32 1.442695, %v298_v24  ;;  %v297_v27 = vsub.f32 %v253_v10, %v289_v25 }
 0x113   : > { %v536_v28 = vpop.eup %535  ;;  %537 = vpow2.f32 %v304_v26  ;;  %v302_v29 = vmul.f32 1.442695, %v297_v27 }
 0x114   : > { %v308_v30 = vsel %vm283_vm0, %v536_v28, 0.0 }
 0x115   : > { %539 = vpow2.f32 %v302_v29  ;;  %309 = vadd.xlane.f32.xlu0 %v308_v30 }
 0x116   : > { %v295_v31 = vpop.xlane.xlu0 %294 }
 0x117   : > { %v299_v32 = vsub.f32 %v279_v12, %v295_v31 }
 0x119   : > { %v538_v33 = vpop.eup %537  ;;  %v306_v34 = vmul.f32 1.442695, %v299_v32 }
 0x11a   : > { %v314_v35 = vsel %vm283_vm0, %v538_v33, 0.0 }
 0x11b   : > { %v540_v36 = vpop.eup %539  ;;  %541 = vpow2.f32 %v306_v34  ;;  %315 = vadd.xlane.f32.xlu2 %v314_v35 }
 0x11c   : > { %v311_v37 = vsel %vm283_vm0, %v540_v36, 0.0 }
 0x11d   : > { %312 = vadd.xlane.f32.xlu1 %v311_v37 }
 0x121   : > { %v542_v38 = vpop.eup %541 }
 0x122   : > { %v317_v39 = vsel %vm283_vm0, %v542_v38, 0.0 }
 0x123   : > { %318 = vadd.xlane.f32.xlu2 %v317_v39 }
 0x188   : > { %v310_v48 = vpop.xlane.xlu0 %309 }
 0x189   : > { %543 = vrcp.f32 %v310_v48 }
 0x18e   : > { %v316_v49 = vpop.xlane.xlu2 %315 }
 0x18f   : > { %v544_v50 = vpop.eup %543  ;;  %545 = vrcp.f32 %v316_v49 }
 0x190   : > { %v324_v51 = vmul.f32 %v544_v50, %v536_v28  ;;  %v313_v52 = vpop.xlane.xlu1 %312 }
 0x191   : > { %547 = vrcp.f32 %v313_v52 }
 0x192   : > { %v328_v53 = vpack.c.bf16 %v324_v51, %v324_v51 }
 0x194   : > { %510 = vmatmul.msk.bf16.vlgmr.msrb.gmra.mxu0 %vm283_vm0, %v328_v53 }
 0x195   : > { %v546_v54 = vpop.eup %545 }
 0x196   : > { %v326_v55 = vmul.f32 %v546_v54, %v538_v33  ;;  %v319_v56 = vpop.xlane.xlu2 %318 }
 0x197   : > { %v548_v57 = vpop.eup %547  ;;  %549 = vrcp.f32 %v319_v56 }
 0x198   : > { %v325_v58 = vmul.f32 %v548_v57, %v540_v36  ;;  %v330_v59 = vpack.c.bf16 %v326_v55, %v326_v55 }
 0x19a   : > { %v329_v60 = vpack.c.bf16 %v325_v58, %v325_v58  ;;  %512 = vmatmul.msk.bf16.vlgmr.msrb.gmra.mxu2 %vm283_vm0, %v330_v59 }
 0x19c   : > { %511 = vmatmul.msk.bf16.vlgmr.msrb.gmra.mxu1 %vm283_vm0, %v329_v60 }
 0x19d   : > { %v550_v61 = vpop.eup %549 }
 0x19e   : > { %v327_v62 = vmul.f32 %v550_v61, %v542_v38 }
 0x1a0   : > { %v331_v63 = vpack.c.bf16 %v327_v62, %v327_v62 }
 0x1a2   : > { %513 = vmatmul.msk.bf16.vlgmr.msrb.gmra.mxu3 %vm283_vm0, %v331_v63 }
 0x211   : > { %v348_v0 = vpop.f32.mrf.mxu0 }
 0x219   : > { %v350_v1 = vpop.f32.mrf.mxu0  ;;  %v367_v2 = vpop.f32.mrf.mxu1 }
 0x21a   : > { %v519_v3 = vpack.c.bf16 %v367_v2, %v348_v0 }
 0x21c   : > { %520 = vst [vmem:[%s216_s27] sm:$0xff] %v519_v3  }
 0x21d   : > { %v386_v4 = vpop.f32.mrf.mxu2 }
 0x221   : > { %v369_v5 = vpop.f32.mrf.mxu1 }
 0x225   : > { %v388_v6 = vpop.f32.mrf.mxu2  ;;  %v405_v7 = vpop.f32.mrf.mxu3 }
 0x226   : > { %v524_v8 = vpack.c.bf16 %v405_v7, %v386_v4 }
 0x228   : > { %526 = vst [vmem:[%s216_s27 + $0x8] sm:$0xff] %v524_v8  }
 0x22d   : > { %v407_v9 = vpop.f32.mrf.mxu3 }
 0x22e PF: > { %s13_s12 = sadd.s32 1, %s557_s12  }
 0x22f   : > { %p10_p4 = scmp.ge.s32.totalorder %s13_s12, 4  }
 0x231   :  { %12 = sbr.rel (!%p10_p4) target bundleno = 1 (0x1), region = 68 }

// kernel: attention_model_forward.7
= control target key start
LH: loop header
LB: loop body
LE: loop exit
PB: predicated region body
PF: predicated region fallthrough
CT: control target
= control target key end

     0   :  { %s587_s1 = inlined_call_operand.vmem [shape: bf16[128,384], index: 1, kind: input, shape index: {}]   ;;  %s588_s0 = inlined_call_operand.vmem [shape: f32[16,128], index: 0, kind: input, shape index: {}]   ;;  %s589_s2 = inlined_call_operand.vmem [shape: f32[1,384], index: 2, kind: input, shape index: {}]   ;;  %s590_s3 = inlined_call_operand.vmem [shape: bf16[16,384], index: 3, kind: output, shape index: {}]  }
   0x1   :  { %v368_v0 = vld [vmem:[%s587_s1 + $0xa8] sm:$0xf]  ;;  %v400_v1 = vld [vmem:[%s587_s1 + $0xb0] sm:$0xf0]  ;;  %v399_v2 = vld [vmem:[%s587_s1 + $0xac] sm:$0xf] }
   0x2   :  { %v369_v3 = vor.u32 %v400_v1, %v368_v0  ;;  %v370_v4 = vld [vmem:[%s587_s1 + $0xb4] sm:$0xf0]  ;;  %v376_v5 = vld [vmem:[%s587_s1 + $0xb0] sm:$0xf]  ;;  %v401_v6 = vld [vmem:[%s587_s1 + $0xb8] sm:$0xf0] }
   0x3   :  { %v373_v7 = vor.u32 %v399_v2, %v370_v4  ;;  %v377_v8 = vor.u32 %v401_v6, %v376_v5  ;;  %v356_v9 = vld [vmem:[%s587_s1 + $0x90] sm:$0xf]  ;;  %v397_v10 = vld [vmem:[%s587_s1 + $0x98] sm:$0xf0]  ;;  %v396_v11 = vld [vmem:[%s587_s1 + $0x94] sm:$0xf] }
   0x4   :  { %193 = vmatpush.bf16.msra.mxu0 %v369_v3  ;;  %v357_v12 = vor.u32 %v397_v10, %v356_v9  ;;  %v358_v13 = vld [vmem:[%s587_s1 + $0x9c] sm:$0xf0]  ;;  %v364_v14 = vld [vmem:[%s587_s1 + $0x98] sm:$0xf]  ;;  %v398_v15 = vld [vmem:[%s587_s1 + $0xa0] sm:$0xf0] }
   0x5   :  { %207 = vmatpush.bf16.msra.mxu1 %v373_v7  ;;  %221 = vmatpush.bf16.msra.mxu2 %v377_v8  ;;  %v361_v16 = vor.u32 %v396_v11, %v358_v13  ;;  %v365_v17 = vor.u32 %v398_v15, %v364_v14  ;;  %v344_v18 = vld [vmem:[%s587_s1 + $0x78] sm:$0xf]  ;;  %v394_v19 = vld [vmem:[%s587_s1 + $0x80] sm:$0xf0]  ;;  %v393_v20 = vld [vmem:[%s587_s1 + $0x7c] sm:$0xf] }
   0x6   :  { %v346_v21 = vld [vmem:[%s587_s1 + $0x84] sm:$0xf0]  ;;  %v352_v22 = vld [vmem:[%s587_s1 + $0x80] sm:$0xf]  ;;  %v395_v23 = vld [vmem:[%s587_s1 + $0x88] sm:$0xf0]  ;;  %v345_v24 = vor.u32 %v394_v19, %v344_v18 }
   0x7   :  { %v349_v25 = vor.u32 %v393_v20, %v346_v21  ;;  %v353_v26 = vor.u32 %v395_v23, %v352_v22  ;;  %v332_v27 = vld [vmem:[%s587_s1 + $0x60] sm:$0xf]  ;;  %v391_v28 = vld [vmem:[%s587_s1 + $0x68] sm:$0xf0]  ;;  %v390_v29 = vld [vmem:[%s587_s1 + $0x64] sm:$0xf] }
   0x8   :  { %194 = vmatpush.bf16.msra.mxu0 %v357_v12  ;;  %v334_v30 = vld [vmem:[%s587_s1 + $0x6c] sm:$0xf0]  ;;  %v340_v31 = vld [vmem:[%s587_s1 + $0x68] sm:$0xf]  ;;  %v392_v32 = vld [vmem:[%s587_s1 + $0x70] sm:$0xf0]  ;;  %v333_v33 = vor.u32 %v391_v28, %v332_v27 }
   0x9   :  { %208 = vmatpush.bf16.msra.mxu1 %v361_v16  ;;  %222 = vmatpush.bf16.msra.mxu2 %v365_v17  ;;  %v337_v34 = vor.u32 %v390_v29, %v334_v30  ;;  %v341_v35 = vor.u32 %v392_v32, %v340_v31  ;;  %v320_v36 = vld [vmem:[%s587_s1 + $0x48] sm:$0xf]  ;;  %v388_v37 = vld [vmem:[%s587_s1 + $0x50] sm:$0xf0]  ;;  %v387_v38 = vld [vmem:[%s587_s1 + $0x4c] sm:$0xf] }
   0xa   :  { %v322_v39 = vld [vmem:[%s587_s1 + $0x54] sm:$0xf0]  ;;  %v328_v40 = vld [vmem:[%s587_s1 + $0x50] sm:$0xf]  ;;  %v389_v41 = vld [vmem:[%s587_s1 + $0x58] sm:$0xf0]  ;;  %v321_v42 = vor.u32 %v388_v37, %v320_v36 }
   0xb   :  { %v325_v43 = vor.u32 %v387_v38, %v322_v39  ;;  %v329_v44 = vor.u32 %v389_v41, %v328_v40  ;;  %v308_v45 = vld [vmem:[%s587_s1 + $0x30] sm:$0xf]  ;;  %v385_v46 = vld [vmem:[%s587_s1 + $0x38] sm:$0xf0]  ;;  %v384_v47 = vld [vmem:[%s587_s1 + $0x34] sm:$0xf] }
   0xc   :  { %195 = vmatpush.bf16.msra.mxu0 %v345_v24  ;;  %v310_v48 = vld [vmem:[%s587_s1 + $0x3c] sm:$0xf0]  ;;  %v316_v49 = vld [vmem:[%s587_s1 + $0x38] sm:$0xf]  ;;  %v386_v50 = vld [vmem:[%s587_s1 + $0x40] sm:$0xf0]  ;;  %v309_v51 = vor.u32 %v385_v46, %v308_v45 }
   0xd   :  { %209 = vmatpush.bf16.msra.mxu1 %v349_v25  ;;  %223 = vmatpush.bf16.msra.mxu2 %v353_v26  ;;  %v313_v52 = vor.u32 %v384_v47, %v310_v48  ;;  %v317_v53 = vor.u32 %v386_v50, %v316_v49  ;;  %v296_v54 = vld [vmem:[%s587_s1 + $0x18] sm:$0xf]  ;;  %v382_v55 = vld [vmem:[%s587_s1 + $0x20] sm:$0xf0]  ;;  %v381_v56 = vld [vmem:[%s587_s1 + $0x1c] sm:$0xf] }
   0xe   :  { %v298_v57 = vld [vmem:[%s587_s1 + $0x24] sm:$0xf0]  ;;  %v304_v58 = vld [vmem:[%s587_s1 + $0x20] sm:$0xf]  ;;  %v383_v59 = vld [vmem:[%s587_s1 + $0x28] sm:$0xf0]  ;;  %v297_v60 = vor.u32 %v382_v55, %v296_v54 }
   0xf   :  { %v301_v61 = vor.u32 %v381_v56, %v298_v57  ;;  %v305_v62 = vor.u32 %v383_v59, %v304_v58  ;;  %v284_v63 = vld [vmem:[%s587_s1] sm:$0xf]  ;;  %v379_v0 = vld [vmem:[%s587_s1 + $0x8] sm:$0xf0]  ;;  %v378_v1 = vld [vmem:[%s587_s1 + $0x4] sm:$0xf] }
  0x10   :  { %196 = vmatpush.bf16.msra.mxu0 %v333_v33  ;;  %v286_v2 = vld [vmem:[%s587_s1 + $0xc] sm:$0xf0]  ;;  %v292_v3 = vld [vmem:[%s587_s1 + $0x8] sm:$0xf]  ;;  %v380_v4 = vld [vmem:[%s587_s1 + $0x10] sm:$0xf0]  ;;  %v285_v5 = vor.u32 %v379_v0, %v284_v63 }
  0x11   :  { %210 = vmatpush.bf16.msra.mxu1 %v337_v34  ;;  %224 = vmatpush.bf16.msra.mxu2 %v341_v35  ;;  %v30_v6 = vld [vmem:[%s588_s0] sm:$0xff]  ;;  %v31_v7 = vld [vmem:[%s588_s0 + $0x8] sm:$0xff]  ;;  %v289_v8 = vor.u32 %v378_v1, %v286_v2  ;;  %v293_v9 = vor.u32 %v380_v4, %v292_v3 }
  0x12   :  { %v32_v10 = vpack.c.bf16 %v31_v7, %v30_v6  ;;  %v256_v11 = vld [vmem:[%s589_s2] sm:$0x7] }
  0x13   :  { %v258_v12 = vperm.slane %v256_v11, 0  ;;  %v259_v13 = vperm.slane %v256_v11, 1  ;;  %v260_v19 = vperm.slane %v256_v11, 2 }
  0x14   :  { %197 = vmatpush.bf16.msra.mxu0 %v321_v42 }
  0x15   :  { %211 = vmatpush.bf16.msra.mxu1 %v325_v43  ;;  %225 = vmatpush.bf16.msra.mxu2 %v329_v44 }
  0x18   :  { %198 = vmatpush.bf16.msra.mxu0 %v309_v51 }
  0x19   :  { %212 = vmatpush.bf16.msra.mxu1 %v313_v52  ;;  %226 = vmatpush.bf16.msra.mxu2 %v317_v53 }
  0x1c   :  { %199 = vmatpush.bf16.msra.mxu0 %v297_v60 }
  0x1d   :  { %213 = vmatpush.bf16.msra.mxu1 %v301_v61  ;;  %227 = vmatpush.bf16.msra.mxu2 %v305_v62 }
  0x20   :  { %200 = vmatpush.bf16.msra.mxu0 %v285_v5 }
  0x21   :  { %214 = vmatpush.bf16.msra.mxu1 %v289_v8  ;;  %228 = vmatpush.bf16.msra.mxu2 %v293_v9 }
  0x23   :  { %201 = vmatmul.bf16.vlgmr.msra.gmra.mxu0 %v32_v10 }
  0x24   :  { %215 = vmatmul.bf16.vlgmr.msra.gmra.mxu1 %v32_v10  ;;  %229 = vmatmul.bf16.vlgmr.msra.gmra.mxu2 %v32_v10 }
  0xa0   :  { %v202_v14 = vpop.f32.mrf.mxu0 }
  0xa1   :  { %v264_v15 = vadd.f32 %v258_v12, %v202_v14  ;;  %v216_v16 = vpop.f32.mrf.mxu1 }
  0xa2   :  { %v265_v17 = vadd.f32 %v259_v13, %v216_v16 }
  0xa4   :  { %v270_v18 = vpack.c.bf16 %v265_v17, %v264_v15 }
  0xa6   :  { %274 = vst [vmem:[%s590_s3] sm:$0xff] %v270_v18 }
  0xa7   :  { %v230_v20 = vpop.f32.mrf.mxu2 }
  0xa8   :  { %v266_v21 = vadd.f32 %v260_v19, %v230_v20  ;;  %v204_v22 = vpop.f32.mrf.mxu0 }
  0xa9   :  { %v267_v23 = vadd.f32 %v258_v12, %v204_v22  ;;  %v218_v24 = vpop.f32.mrf.mxu1 }
  0xaa   :  { %v271_v25 = vpack.c.bf16 %v266_v21, %v266_v21  ;;  %v268_v26 = vadd.f32 %v259_v13, %v218_v24 }
  0xac   :  { %275 = vst [vmem:[%s590_s3 + $0x8] sm:$0xf] %v271_v25  ;;  %v272_v27 = vpack.c.bf16 %v268_v26, %v267_v23 }
  0xae   :  { %276 = vst [vmem:[%s590_s3 + $0xc] sm:$0xff] %v272_v27 }
  0xaf   :  { %v232_v28 = vpop.f32.mrf.mxu2 }
  0xb0   :  { %v269_v29 = vadd.f32 %v260_v19, %v232_v28 }
  0xb2   :  { %v273_v30 = vpack.c.bf16 %v269_v29, %v269_v29 }
  0xb4   :  { %277 = vst [vmem:[%s590_s3 + $0x14] sm:$0xf] %v273_v30 }

// kernel: attention_model_forward.9
= control target key start
LH: loop header
LB: loop body
LE: loop exit
PB: predicated region body
PF: predicated region fallthrough
CT: control target
= control target key end

     0   :  { %v141_v9 = vlaneseq  ;;  %s791_s2 = inlined_call_operand.vmem [shape: bf16[128,128], index: 2, kind: input, shape index: {}]   ;;  %s792_s3 = inlined_call_operand.vmem [shape: f32[1,128], index: 3, kind: input, shape index: {}]   ;;  %s793_s0 = inlined_call_operand.vmem [shape: bf16[16,128], index: 0, kind: input, shape index: {}]   ;;  %s794_s1 = inlined_call_operand.vmem [shape: f32[16,128], index: 1, kind: input, shape index: {}]   ;;  %s795_s4 = inlined_call_operand.vmem [shape: f32[1,128], index: 4, kind: input, shape index: {}]   ;;  %s796_s5 = inlined_call_operand.vmem [shape: f32[1,128], index: 5, kind: input, shape index: {}]   ;;  %s797_s7 = inlined_call_operand.vmem [shape: f32[1,128], index: 7, kind: input, shape index: {}]   ;;  %s798_s6 = inlined_call_operand.vmem [shape: bf16[128,128], index: 6, kind: input, shape index: {}]   ;;  %s799_s8 = inlined_call_operand.vmem [shape: bf16[128,128], index: 8, kind: input, shape index: {}]   ;;  %s800_s9 = inlined_call_operand.vmem [shape: f32[1,128], index: 9, kind: input, shape index: {}]   ;;  %s801_s10 = inlined_call_operand.vmem [shape: f32[1,128], index: 10, kind: input, shape index: {}]   ;;  %s802_s11 = inlined_call_operand.vmem [shape: f32[1,128], index: 11, kind: input, shape index: {}]   ;;  %s803_s12 = inlined_call_operand.vmem [shape: f32[16,128], index: 12, kind: output, shape index: {}]  }
   0x1   :  { %v562_v0 = vld [vmem:[%s791_s2 + $0x38] sm:$0xff]  ;;  %v561_v1 = vld [vmem:[%s791_s2 + $0x30] sm:$0xff]  ;;  %v560_v2 = vld [vmem:[%s791_s2 + $0x28] sm:$0xff] }
   0x2   :  { %121 = vmatpush.bf16.msra.mxu0 %v562_v0  ;;  %v559_v3 = vld [vmem:[%s791_s2 + $0x20] sm:$0xff]  ;;  %v558_v4 = vld [vmem:[%s791_s2 + $0x18] sm:$0xff]  ;;  %v557_v5 = vld [vmem:[%s791_s2 + $0x10] sm:$0xff]  ;;  %v689_v11 = vand.u32 127, %v141_v9 }
   0x3   :  { %v556_v6 = vld [vmem:[%s791_s2 + $0x8] sm:$0xff]  ;;  %v555_v7 = vld [vmem:[%s791_s2] sm:$0xff]  ;;  %v570_v32 = vld [vmem:[%s798_s6 + $0x38] sm:$0xff] }
   0x4   :  { %v554_v8 = vld [vmem:[%s793_s0] sm:$0xff]  ;;  %vm143_vm0 = vcmp.lt.s32.totalorder %v689_v11, 32  ;;  %v136_v18 = vld [vmem:[%s794_s1 + $0x8] sm:$0xff]  ;;  %273 = vmatpush.bf16.msra.mxu1 %v570_v32  ;;  %v569_v33 = vld [vmem:[%s798_s6 + $0x30] sm:$0xff] }
   0x5   :  { %v579_v10 = vld [vmem:[%s792_s3] ss:$0 sm:$0xff]  ;;  %v568_v34 = vld [vmem:[%s798_s6 + $0x28] sm:$0xff]  ;;  %v566_v36 = vld [vmem:[%s798_s6 + $0x18] sm:$0xff] }
   0x6   :  { %122 = vmatpush.bf16.msra.mxu0 %v561_v1  ;;  %v135_v13 = vld [vmem:[%s794_s1] sm:$0xff]  ;;  %v565_v37 = vld [vmem:[%s798_s6 + $0x10] sm:$0xff]  ;;  %v564_v38 = vld [vmem:[%s798_s6 + $0x8] sm:$0xff] }
   0x7   :  { %v567_v35 = vld [vmem:[%s798_s6 + $0x20] sm:$0xff]  ;;  %v578_v43 = vld [vmem:[%s799_s8 + $0x38] sm:$0xff]  ;;  %v577_v46 = vld [vmem:[%s799_s8 + $0x30] sm:$0xff] }
   0x8   :  { %274 = vmatpush.bf16.msra.mxu1 %v569_v33  ;;  %v563_v40 = vld [vmem:[%s798_s6] sm:$0xff]  ;;  %356 = vmatpush.bf16.msra.mxu2 %v578_v43  ;;  %v576_v50 = vld [vmem:[%s799_s8 + $0x28] sm:$0xff]  ;;  %v574_v9 = vld [vmem:[%s799_s8 + $0x18] sm:$0xff] }
   0x9   :  { %v575_v53 = vld [vmem:[%s799_s8 + $0x20] sm:$0xff] }
   0xa   :  { %123 = vmatpush.bf16.msra.mxu0 %v560_v2  ;;  %v580_v63 = vld [vmem:[%s795_s4] ss:$0 sm:$0xff] }
   0xc   :  { %275 = vmatpush.bf16.msra.mxu1 %v568_v34  ;;  %357 = vmatpush.bf16.msra.mxu2 %v577_v46 }
   0xe   :  { %124 = vmatpush.bf16.msra.mxu0 %v559_v3 }
  0x10   :  { %276 = vmatpush.bf16.msra.mxu1 %v567_v35  ;;  %358 = vmatpush.bf16.msra.mxu2 %v576_v50 }
  0x12   :  { %125 = vmatpush.bf16.msra.mxu0 %v558_v4  ;;  %v581_v4 = vld [vmem:[%s796_s5] ss:$0 sm:$0xff] }
  0x14   :  { %277 = vmatpush.bf16.msra.mxu1 %v566_v36  ;;  %359 = vmatpush.bf16.msra.mxu2 %v575_v53 }
  0x16   :  { %126 = vmatpush.bf16.msra.mxu0 %v557_v5 }
  0x18   :  { %278 = vmatpush.bf16.msra.mxu1 %v565_v37  ;;  %360 = vmatpush.bf16.msra.mxu2 %v574_v9 }
  0x1a   :  { %127 = vmatpush.bf16.msra.mxu0 %v556_v6 }
  0x1c   :  { %279 = vmatpush.bf16.msra.mxu1 %v564_v38 }
  0x1e   :  { %128 = vmatpush.bf16.msra.mxu0 %v555_v7 }
  0x20   :  { %280 = vmatpush.bf16.msra.mxu1 %v563_v40 }
  0x21   :  { %129 = vmatmul.bf16.vlgmr.msra.gmra.mxu0 %v554_v8 }
  0x9e   :  { %v130_v12 = vpop.f32.mrf.mxu0 }
  0x9f   :  { %v131_v14 = vadd.f32 %v579_v10, %v130_v12  ;;  %v572_v12 = vld [vmem:[%s799_s8 + $0x8] sm:$0xff] }
  0xa1   :  { %v137_v15 = vadd.f32 %v135_v13, %v131_v14  ;;  %v571_v13 = vld [vmem:[%s799_s8] sm:$0xff] }
  0xa3   :  { %v144_v16 = vsel %vm143_vm0, %v137_v15, 0.0 }
  0xa4   :  { %146 = vadd.xlane.f32.xlu0 %v144_v16 }
  0xa6   :  { %v132_v17 = vpop.f32.mrf.mxu0 }
  0xa7   :  { %v133_v19 = vadd.f32 %v579_v10, %v132_v17  ;;  %v573_v10 = vld [vmem:[%s799_s8 + $0x10] sm:$0xff] }
  0xa8   :  { %361 = vmatpush.bf16.msra.mxu2 %v573_v10 }
  0xa9   :  { %v138_v20 = vadd.f32 %v136_v18, %v133_v19 }
  0xab   :  { %v145_v21 = vsel %vm143_vm0, %v138_v20, 0.0 }
  0xac   :  { %148 = vadd.xlane.f32.xlu0 %v145_v21  ;;  %362 = vmatpush.bf16.msra.mxu2 %v572_v12 }
  0xb0   :  { %363 = vmatpush.bf16.msra.mxu2 %v571_v13 }
 0x117   :  { %v147_v22 = vpop.xlane.xlu0 %146 }
 0x118   :  { %v150_v23 = vmul.f32 0.03125, %v147_v22  ;;  %v583_v22 = vld [vmem:[%s800_s9] ss:$0 sm:$0xff] }
 0x11a   :  { %v152_v24 = vsub.f32 %v137_v15, %v150_v23  ;;  %v582_v15 = vld [vmem:[%s797_s7] ss:$0 sm:$0xff] }
 0x11c   :  { %v154_v25 = vsel %vm143_vm0, %v152_v24, 0.0 }
 0x11d   :  { %v156_v26 = vmul.f32 %v154_v25, %v154_v25 }
 0x11f   :  { %158 = vadd.xlane.f32.xlu1 %v156_v26  ;;  %v149_v27 = vpop.xlane.xlu0 %148 }
 0x120   :  { %v151_v28 = vmul.f32 0.03125, %v149_v27 }
 0x122   :  { %v153_v29 = vsub.f32 %v138_v20, %v151_v28 }
 0x124   :  { %v706_v30 = vsel %vm143_vm0, %v153_v29, 0.0 }
 0x125   :  { %v157_v31 = vmul.f32 %v706_v30, %v706_v30 }
 0x127   :  { %160 = vadd.xlane.f32.xlu1 %v157_v31 }
 0x192   :  { %v159_v39 = vpop.xlane.xlu1 %158 }
 0x193   :  { %v162_v41 = vmul.f32 0.03125, %v159_v39 }
 0x195   :  { %v164_v42 = vadd.f32 1e-05, %v162_v41 }
 0x197   :  { %586 = vrsqrt.f32 %v164_v42  ;;  %vm172_vm2 = vweird.f32 %v164_v42 }
 0x19a   :  { %v161_v44 = vpop.xlane.xlu1 %160 }
 0x19b   :  { %v163_v45 = vmul.f32 0.03125, %v161_v44 }
 0x19d   :  { %v587_v47 = vpop.eup %586  ;;  %v165_v48 = vadd.f32 1e-05, %v163_v45 }
 0x19e   :  { %v167_v49 = vmul.f32 %v587_v47, %v164_v42  ;;  %vm173_vm1 = vweird.f32 %v587_v47 }
 0x19f   :  { %588 = vrsqrt.f32 %v165_v48  ;;  %vm174_vm3 = vmor %vm172_vm2, %vm173_vm1  ;;  %vm182_vm5 = vweird.f32 %v165_v48 }
 0x1a0   :  { %v168_v51 = vmul.f32 %v587_v47, %v167_v49 }
 0x1a2   :  { %v169_v52 = vmul.f32 0.5, %v168_v51 }
 0x1a4   :  { %v170_v54 = vsub.f32 1.5, %v169_v52 }
 0x1a5   :  { %v589_v55 = vpop.eup %588 }
 0x1a6   :  { %v171_v56 = vmul.f32 %v587_v47, %v170_v54  ;;  %v177_v57 = vmul.f32 %v589_v55, %v165_v48  ;;  %vm183_vm4 = vweird.f32 %v589_v55  ;;  %v584_v54 = vld [vmem:[%s801_s10] ss:$0 sm:$0xff] }
 0x1a7   :  { %vm184_vm6 = vmor %vm182_vm5, %vm183_vm4 }
 0x1a8   :  { %v178_v58 = vmul.f32 %v589_v55, %v177_v57  ;;  %v175_v60 = vsel %vm174_vm3, %v587_v47, %v171_v56  ;;  %v585_v57 = vld [vmem:[%s802_s11] ss:$0 sm:$0xff] }
 0x1a9   :  { %v186_v62 = vmul.f32 %v175_v60, %v154_v25 }
 0x1aa   :  { %v179_v59 = vmul.f32 0.5, %v178_v58 }
 0x1ab   :  { %v191_v3 = vmul.f32 %v580_v63, %v186_v62 }
 0x1ac   :  { %v180_v61 = vsub.f32 1.5, %v179_v59 }
 0x1ad   :  { %v196_v6 = vadd.f32 %v581_v4, %v191_v3 }
 0x1ae   :  { %v181_v0 = vmul.f32 %v589_v55, %v180_v61 }
 0x1b0   :  { %v185_v1 = vsel %vm184_vm6, %v589_v55, %v181_v0 }
 0x1b1   :  { %v187_v2 = vmul.f32 %v185_v1, %v706_v30 }
 0x1b3   :  { %v192_v5 = vmul.f32 %v580_v63, %v187_v2 }
 0x1b5   :  { %v197_v7 = vadd.f32 %v581_v4, %v192_v5 }
 0x1b7   :  { %v204_v8 = vpack.c.bf16 %v197_v7, %v196_v6 }
 0x1b9   :  { %281 = vmatmul.bf16.vlgmr.msra.gmra.mxu1 %v204_v8 }
 0x236   :  { %v282_v14 = vpop.f32.mrf.mxu1 }
 0x237   :  { %v283_v16 = vadd.f32 %v582_v15, %v282_v14 }
 0x239   :  { %v287_v19 = vmax.f32 %v283_v16, 0.0 }
 0x23e   :  { %v284_v17 = vpop.f32.mrf.mxu1 }
 0x23f   :  { %v285_v18 = vadd.f32 %v582_v15, %v284_v17 }
 0x241   :  { %v288_v20 = vmax.f32 %v285_v18, 0.0 }
 0x243   :  { %v291_v21 = vpack.c.bf16 %v288_v20, %v287_v19 }
 0x245   :  { %364 = vmatmul.bf16.vlgmr.msra.gmra.mxu2 %v291_v21 }
 0x2c8   :  { %v365_v23 = vpop.f32.mrf.mxu2 }
 0x2c9   :  { %v383_v24 = vadd.f32 %v583_v22, %v365_v23 }
 0x2cb   :  { %v387_v25 = vadd.f32 %v383_v24, %v196_v6 }
 0x2cd   :  { %v394_v26 = vsel %vm143_vm0, %v387_v25, 0.0 }
 0x2ce   :  { %396 = vadd.xlane.f32.xlu2 %v394_v26 }
 0x2d0   :  { %v367_v27 = vpop.f32.mrf.mxu2 }
 0x2d1   :  { %v384_v28 = vadd.f32 %v583_v22, %v367_v27 }
 0x2d3   :  { %v388_v29 = vadd.f32 %v384_v28, %v197_v7 }
 0x2d5   :  { %v395_v30 = vsel %vm143_vm0, %v388_v29, 0.0 }
 0x2d6   :  { %398 = vadd.xlane.f32.xlu2 %v395_v30 }
 0x341   :  { %v397_v31 = vpop.xlane.xlu2 %396 }
 0x342   :  { %v400_v32 = vmul.f32 0.03125, %v397_v31 }
 0x344   :  { %v402_v33 = vsub.f32 %v387_v25, %v400_v32 }
 0x346   :  { %v404_v34 = vsel %vm143_vm0, %v402_v33, 0.0 }
 0x347   :  { %v406_v35 = vmul.f32 %v404_v34, %v404_v34 }
 0x349   :  { %408 = vadd.xlane.f32.xlu0 %v406_v35  ;;  %v399_v36 = vpop.xlane.xlu2 %398 }
 0x34a   :  { %v401_v37 = vmul.f32 0.03125, %v399_v36 }
 0x34c   :  { %v403_v38 = vsub.f32 %v388_v29, %v401_v37 }
 0x34e   :  { %v405_v39 = vsel %vm143_vm0, %v403_v38, 0.0 }
 0x34f   :  { %v407_v40 = vmul.f32 %v405_v39, %v405_v39 }
 0x351   :  { %410 = vadd.xlane.f32.xlu1 %v407_v40 }
 0x3bc   :  { %v409_v41 = vpop.xlane.xlu0 %408 }
 0x3bd   :  { %v412_v42 = vmul.f32 0.03125, %v409_v41 }
 0x3bf   :  { %v414_v43 = vadd.f32 1e-05, %v412_v42 }
 0x3c1   :  { %590 = vrsqrt.f32 %v414_v43  ;;  %vm422_vm8 = vweird.f32 %v414_v43 }
 0x3c4   :  { %v411_v44 = vpop.xlane.xlu1 %410 }
 0x3c5   :  { %v413_v45 = vmul.f32 0.03125, %v411_v44 }
 0x3c7   :  { %v591_v46 = vpop.eup %590  ;;  %v415_v47 = vadd.f32 1e-05, %v413_v45 }
 0x3c8   :  { %v417_v48 = vmul.f32 %v591_v46, %v414_v43  ;;  %vm423_vm7 = vweird.f32 %v591_v46 }
 0x3c9   :  { %592 = vrsqrt.f32 %v415_v47  ;;  %vm424_vm9 = vmor %vm422_vm8, %vm423_vm7  ;;  %vm432_vm11 = vweird.f32 %v415_v47 }
 0x3ca   :  { %v418_v49 = vmul.f32 %v591_v46, %v417_v48 }
 0x3cc   :  { %v419_v50 = vmul.f32 0.5, %v418_v49 }
 0x3ce   :  { %v420_v51 = vsub.f32 1.5, %v419_v50 }
 0x3cf   :  { %v593_v52 = vpop.eup %592 }
 0x3d0   :  { %v421_v53 = vmul.f32 %v591_v46, %v420_v51  ;;  %v427_v11 = vmul.f32 %v593_v52, %v415_v47  ;;  %vm433_vm10 = vweird.f32 %v593_v52 }
 0x3d1   :  { %vm434_vm12 = vmor %vm432_vm11, %vm433_vm10 }
 0x3d2   :  { %v425_v55 = vsel %vm424_vm9, %v591_v46, %v421_v53  ;;  %v428_v56 = vmul.f32 %v593_v52, %v427_v11 }
 0x3d3   :  { %v436_v58 = vmul.f32 %v425_v55, %v404_v34 }
 0x3d4   :  { %v429_v59 = vmul.f32 0.5, %v428_v56 }
 0x3d5   :  { %v441_v60 = vmul.f32 %v584_v54, %v436_v58 }
 0x3d6   :  { %v430_v61 = vsub.f32 1.5, %v429_v59 }
 0x3d7   :  { %v446_v62 = vadd.f32 %v585_v57, %v441_v60 }
 0x3d8   :  { %v431_v63 = vmul.f32 %v593_v52, %v430_v61 }
 0x3d9   :  { %448 = vst [vmem:[%s803_s12] sm:$0xff] %v446_v62 }
 0x3da   :  { %v435_v0 = vsel %vm434_vm12, %v593_v52, %v431_v63 }
 0x3db   :  { %v437_v1 = vmul.f32 %v435_v0, %v405_v39 }
 0x3dd   :  { %v442_v2 = vmul.f32 %v584_v54, %v437_v1 }
 0x3df   :  { %v447_v3 = vadd.f32 %v585_v57, %v442_v2 }
 0x3e1   :  { %449 = vst [vmem:[%s803_s12 + $0x8] sm:$0xff] %v447_v3 }

// kernel: attention_model_forward.13
= control target key start
LH: loop header
LB: loop body
LE: loop exit
PB: predicated region body
PF: predicated region fallthrough
CT: control target
= control target key end

     0   :  { %s375_s1 = inlined_call_operand.vmem [shape: bf16[256,128], index: 1, kind: input, shape index: {}]   ;;  %s376_s0 = inlined_call_operand.vmem [shape: f32[16,256], index: 0, kind: input, shape index: {}]   ;;  %s377_s2 = inlined_call_operand.vmem [shape: f32[1,128], index: 2, kind: input, shape index: {}]   ;;  %s378_s3 = inlined_call_operand.vmem [shape: f32[16,128], index: 3, kind: output, shape index: {}]  }
   0x1   :  { %v276_v0 = vld [vmem:[%s375_s1 + $0x38] sm:$0xff]  ;;  %v275_v2 = vld [vmem:[%s375_s1 + $0x30] sm:$0xff]  ;;  %v274_v4 = vld [vmem:[%s375_s1 + $0x28] sm:$0xff] }
   0x2   :  { %v284_v1 = vld [vmem:[%s375_s1 + $0x78] sm:$0xff]  ;;  %156 = vmatpush.bf16.msra.mxu0 %v276_v0  ;;  %v283_v3 = vld [vmem:[%s375_s1 + $0x70] sm:$0xff]  ;;  %v282_v5 = vld [vmem:[%s375_s1 + $0x68] sm:$0xff] }
   0x3   :  { %170 = vmatpush.bf16.msra.mxu1 %v284_v1  ;;  %v273_v6 = vld [vmem:[%s375_s1 + $0x20] sm:$0xff]  ;;  %v272_v8 = vld [vmem:[%s375_s1 + $0x18] sm:$0xff]  ;;  %v271_v10 = vld [vmem:[%s375_s1 + $0x10] sm:$0xff] }
   0x4   :  { %v281_v7 = vld [vmem:[%s375_s1 + $0x60] sm:$0xff]  ;;  %v280_v9 = vld [vmem:[%s375_s1 + $0x58] sm:$0xff]  ;;  %v279_v11 = vld [vmem:[%s375_s1 + $0x50] sm:$0xff] }
   0x5   :  { %v270_v12 = vld [vmem:[%s375_s1 + $0x8] sm:$0xff]  ;;  %v269_v14 = vld [vmem:[%s375_s1] sm:$0xff]  ;;  %v24_v17 = vld [vmem:[%s376_s0 + $0x10] sm:$0xff] }
   0x6   :  { %157 = vmatpush.bf16.msra.mxu0 %v275_v2  ;;  %v278_v13 = vld [vmem:[%s375_s1 + $0x48] sm:$0xff]  ;;  %v277_v15 = vld [vmem:[%s375_s1 + $0x40] sm:$0xff]  ;;  %v25_v19 = vld [vmem:[%s376_s0 + $0x18] sm:$0xff] }
   0x7   :  { %171 = vmatpush.bf16.msra.mxu1 %v283_v3  ;;  %v22_v16 = vld [vmem:[%s376_s0] sm:$0xff]  ;;  %v23_v18 = vld [vmem:[%s376_s0 + $0x8] sm:$0xff] }
   0x8   :  { %v26_v20 = vpack.c.bf16 %v24_v17, %v22_v16  ;;  %v27_v21 = vpack.c.bf16 %v25_v19, %v23_v18  ;;  %v285_v22 = vld [vmem:[%s377_s2] ss:$0 sm:$0xff] }
   0xa   :  { %158 = vmatpush.bf16.msra.mxu0 %v274_v4 }
   0xb   :  { %172 = vmatpush.bf16.msra.mxu1 %v282_v5 }
   0xe   :  { %159 = vmatpush.bf16.msra.mxu0 %v273_v6 }
   0xf   :  { %173 = vmatpush.bf16.msra.mxu1 %v281_v7 }
  0x12   :  { %160 = vmatpush.bf16.msra.mxu0 %v272_v8 }
  0x13   :  { %174 = vmatpush.bf16.msra.mxu1 %v280_v9 }
  0x16   :  { %161 = vmatpush.bf16.msra.mxu0 %v271_v10 }
  0x17   :  { %175 = vmatpush.bf16.msra.mxu1 %v279_v11 }
  0x1a   :  { %162 = vmatpush.bf16.msra.mxu0 %v270_v12 }
  0x1b   :  { %176 = vmatpush.bf16.msra.mxu1 %v278_v13 }
  0x1e   :  { %163 = vmatpush.bf16.msra.mxu0 %v269_v14 }
  0x1f   :  { %177 = vmatpush.bf16.msra.mxu1 %v277_v15 }
  0x21   :  { %164 = vmatmul.bf16.vlgmr.msra.gmra.mxu0 %v26_v20 }
  0x22   :  { %178 = vmatmul.bf16.vlgmr.msra.gmra.mxu1 %v27_v21 }
  0x9e   :  { %v165_v23 = vpop.f32.mrf.mxu0 }
  0x9f   :  { %v179_v24 = vpop.f32.mrf.mxu1 }
  0xa0   :  { %v180_v25 = vadd.f32 %v179_v24, %v165_v23 }
  0xa2   :  { %v197_v26 = vadd.f32 %v285_v22, %v180_v25 }
  0xa4   :  { %199 = vst [vmem:[%s378_s3] sm:$0xff] %v197_v26 }
  0xa6   :  { %v167_v27 = vpop.f32.mrf.mxu0 }
  0xa7   :  { %v181_v28 = vpop.f32.mrf.mxu1 }
  0xa8   :  { %v182_v29 = vadd.f32 %v181_v28, %v167_v27 }
  0xaa   :  { %v198_v30 = vadd.f32 %v285_v22, %v182_v29 }
  0xac   :  { %200 = vst [vmem:[%s378_s3 + $0x8] sm:$0xff] %v198_v30 }

</bundles_post_ra>
